<compile_context>
chip_gen: v6e
topology: v6e:2x2x1
jax: 0.10.0
libtpu: 0.0.40
codegen_flags: <defaults>
</compile_context>

<pallas_src>
import functools
import math

import jax
import jax.numpy as jnp
from jax.experimental import pallas as pl
from jax.experimental.pallas import tpu as pltpu


def _encoder_layer_kernel(x_ref, wqkv_ref, bqkv_ref, wo_ref, bo_ref,
                          w1_ref, b1_ref, w2_ref, b2_ref,
                          g1_ref, be1_ref, g2_ref, be2_ref,
                          o_ref, attn_ref,
                          *, nhead, eps, kv_chunk, dff_chunk):
    Bt, S, E = x_ref.shape
    D = E // nhead
    scale = 1.0 / math.sqrt(D)
    n_kv = S // kv_chunk
    dff = w1_ref.shape[1]
    n_dff = dff // dff_chunk

    x = x_ref[...].reshape(Bt * S, E)                 # f32 residual path
    xb = x.astype(jnp.bfloat16)

    # ---- joint QKV projection (Linear E -> 3E): one big MXU matmul ----
    joint = (jnp.dot(xb, wqkv_ref[...], preferred_element_type=jnp.float32)
             + bqkv_ref[0]).astype(jnp.bfloat16)
    q_all = joint[:, :E]
    k_all = joint[:, E:2 * E]
    v_all = joint[:, 2 * E:]

    # ---- multi-head attention (no mask, dropout=0) ----
    # Heads unrolled with static lane slices; scores are KV-tiled with an
    # online softmax so the live intermediate is (Bt, S, kv_chunk).  Head
    # outputs go contiguously into `attn_ref`, so the out-projection below is
    # a single K=E matmul instead of nhead K=D dots + an SSA add chain.
    for h in range(nhead):
        qh = q_all[:, h * D:(h + 1) * D].reshape(Bt, S, D)
        kh = k_all[:, h * D:(h + 1) * D].reshape(Bt, S, D)
        vh = v_all[:, h * D:(h + 1) * D].reshape(Bt, S, D)

        if n_kv == 1:
            s = jnp.einsum("bqd,bkd->bqk", qh, kh,
                           preferred_element_type=jnp.float32) * scale
            s = s - jnp.max(s, axis=-1, keepdims=True)
            p = jnp.exp(s)
            l = jnp.sum(p, axis=-1, keepdims=True)
            oh = jnp.einsum("bqk,bkd->bqd", p.astype(jnp.bfloat16), vh,
                            preferred_element_type=jnp.float32) / l
        else:
            m = jnp.full((Bt, S, 1), -jnp.inf, jnp.float32)
            l = jnp.zeros((Bt, S, 1), jnp.float32)
            acc = jnp.zeros((Bt, S, D), jnp.float32)
            for c in range(n_kv):
                kc = kh[:, c * kv_chunk:(c + 1) * kv_chunk, :]
                vc = vh[:, c * kv_chunk:(c + 1) * kv_chunk, :]
                s = jnp.einsum("bqd,bkd->bqk", qh, kc,
                               preferred_element_type=jnp.float32) * scale
                m_new = jnp.maximum(m, jnp.max(s, axis=-1, keepdims=True))
                alpha = jnp.exp(m - m_new)
                p = jnp.exp(s - m_new)
                l = alpha * l + jnp.sum(p, axis=-1, keepdims=True)
                acc = alpha * acc + jnp.einsum(
                    "bqk,bkd->bqd", p.astype(jnp.bfloat16), vc,
                    preferred_element_type=jnp.float32)
                m = m_new
            oh = acc / l

        attn_ref[:, h * D:(h + 1) * D] = oh.reshape(Bt * S, D)

    # ---- out-projection: single (Bt*S, E) x (E, E) matmul, K = E ----
    sa = jnp.dot(attn_ref[...].astype(jnp.bfloat16), wo_ref[...],
                 preferred_element_type=jnp.float32) + bo_ref[0]

    # ---- residual + LayerNorm1 (f32) ----
    h1 = x + sa
    mu = jnp.mean(h1, axis=-1, keepdims=True)
    var = jnp.mean((h1 - mu) ** 2, axis=-1, keepdims=True)
    h1 = (h1 - mu) * jax.lax.rsqrt(var + eps) * g1_ref[0] + be1_ref[0]

    # ---- feed-forward (dff-tiled): linear2(relu(linear1(h1))) ----
    h1b = h1.astype(jnp.bfloat16)
    if n_dff == 1:
        t = jnp.dot(h1b, w1_ref[...], preferred_element_type=jnp.float32) + b1_ref[0]
        t = jnp.maximum(t, 0.0).astype(jnp.bfloat16)
        ff = jnp.dot(t, w2_ref[...], preferred_element_type=jnp.float32)
    else:
        ff = jnp.zeros((Bt * S, E), jnp.float32)
        for c in range(n_dff):
            c0 = c * dff_chunk
            t = (jnp.dot(h1b, w1_ref[:, c0:c0 + dff_chunk],
                         preferred_element_type=jnp.float32)
                 + b1_ref[0, c0:c0 + dff_chunk])
            t = jnp.maximum(t, 0.0).astype(jnp.bfloat16)
            ff = ff + jnp.dot(t, w2_ref[c0:c0 + dff_chunk, :],
                              preferred_element_type=jnp.float32)
    ff = ff + b2_ref[0]

    # ---- residual + LayerNorm2 (f32) ----
    h2 = h1 + ff
    mu2 = jnp.mean(h2, axis=-1, keepdims=True)
    var2 = jnp.mean((h2 - mu2) ** 2, axis=-1, keepdims=True)
    h2 = (h2 - mu2) * jax.lax.rsqrt(var2 + eps) * g2_ref[0] + be2_ref[0]

    o_ref[...] = h2.reshape(Bt, S, E)


def _tpu_caps():
    vmem_cap = 64 * 1024 * 1024
    try:
        vmem_cap = int(pltpu.get_tpu_info().vmem_capacity_bytes)
    except Exception:
        pass
    kind = ""
    try:
        kind = jax.devices()[0].device_kind.lower()
    except Exception:
        pass
    is_v5e = ("v5e" in kind) or ("v5 lite" in kind) or ("v5lite" in kind)
    return vmem_cap, is_v5e


def _largest_divisor_leq(n, cap):
    for d in range(min(cap, n), 0, -1):
        if n % d == 0:
            return d
    return n


def _pick_block_b(batch, seq, target_rows):
    """Batch elements per grid step: enough MXU rows, but keep >=4 grid steps
    (when the batch allows) so both v7x TensorCores pipeline several steps."""
    want = max(1, target_rows // max(1, seq))
    if batch >= 4:
        want = min(want, batch // 4)
    elif batch >= 2:
        want = min(want, batch // 2)
    want = max(1, want)
    best = 1
    for d in range(1, batch + 1):
        if batch % d == 0 and d <= want:
            best = d
    return best


def transformer_encoder_layer(x, params, *, nhead, eps=1e-5, block_b=None,
                              kv_chunk=None, dff_chunk=None):
    """x: (B, S, E) float32 (batch_first). params: dict of weights (see init_params)."""
    B, S, E = x.shape
    assert E % nhead == 0, "embed_dim must be divisible by nhead"
    dff = params["w1"].shape[1]

    vmem_cap, is_v5e = _tpu_caps()
    # Headroom for Mosaic internal scratch / DMA machinery:
    # 64 MiB part (v7x) -> 48 MiB limit; 128 MiB part (v5e/v6e) -> 96 MiB limit.
    vmem_limit = int(max(16 * 1024 * 1024, (vmem_cap * 3) // 4))

    target_rows = 256 if is_v5e else 512   # v5e MXU 4x128^2; v6e/v7x 2x256^2
    if block_b is None:
        block_b = _pick_block_b(B, S, target_rows)
    assert B % block_b == 0

    if kv_chunk is None:
        kv_chunk = S if S <= 512 else _largest_divisor_leq(S, 512)
        if kv_chunk < 128:
            kv_chunk = S
    assert S % kv_chunk == 0
    if dff_chunk is None:
        dff_chunk = dff if dff <= 1024 else _largest_divisor_leq(dff, 1024)
        if dff_chunk < 128:
            dff_chunk = dff
    assert dff % dff_chunk == 0

    # bf16 weights: halves HBM traffic and resident VMEM; matmuls accumulate f32.
    wqkv = params["wqkv"].astype(jnp.bfloat16)
    wo = params["wo"].astype(jnp.bfloat16)
    w1 = params["w1"].astype(jnp.bfloat16)
    w2 = params["w2"].astype(jnp.bfloat16)

    D = E // nhead
    flops = 2 * B * S * E * (3 * E + E + 2 * dff) + 4 * B * nhead * S * S * D
    weight_bytes = 2 * (E * 3 * E + E * E + 2 * E * dff) + 4 * (3 * E + dff + 6 * E)
    cost = pl.CostEstimate(
        flops=int(flops),
        transcendentals=int(B * nhead * S * S),
        bytes_accessed=int(weight_bytes + 2 * B * S * E * 4))

    kernel = functools.partial(_encoder_layer_kernel, nhead=nhead, eps=eps,
                               kv_chunk=kv_chunk, dff_chunk=dff_chunk)

    def build(single_buffer_weights):
        extra = {}
        if single_buffer_weights:
            # Constant index_map every grid step: double-buffering resident
            # weights only doubles their VMEM footprint.
            extra = dict(pipeline_mode=pl.Buffered(1))

        def const2d(shape):
            return pl.BlockSpec(shape, lambda b: (0, 0), **extra)

        return pl.pallas_call(
            kernel,
            out_shape=jax.ShapeDtypeStruct((B, S, E), jnp.float32),
            grid_spec=pltpu.PrefetchScalarGridSpec(
                num_scalar_prefetch=0,
                grid=(B // block_b,),
                in_specs=[
                    pl.BlockSpec((block_b, S, E), lambda b: (b, 0, 0)),   # x
                    const2d((E, 3 * E)),                                  # wqkv (bf16)
                    const2d((1, 3 * E)),                                  # bqkv
                    const2d((E, E)),                                      # wo (bf16)
                    const2d((1, E)),                                      # bo
                    const2d((E, dff)),                                    # w1 (bf16)
                    const2d((1, dff)),                                    # b1
                    const2d((dff, E)),                                    # w2 (bf16)
                    const2d((1, E)),                                      # b2
                    const2d((1, E)),                                      # ln1 gamma
                    const2d((1, E)),                                      # ln1 beta
                    const2d((1, E)),                                      # ln2 gamma
                    const2d((1, E)),                                      # ln2 beta
                ],
                out_specs=pl.BlockSpec((block_b, S, E), lambda b: (b, 0, 0)),
                scratch_shapes=[pltpu.VMEM((block_b * S, E), jnp.float32)],
            ),
            compiler_params=pltpu.CompilerParams(
                dimension_semantics=("parallel",),
                vmem_limit_bytes=vmem_limit),
            cost_estimate=cost,
        )

    args = (x, wqkv, params["bqkv"], wo, params["bo"],
            w1, params["b1"], w2, params["b2"],
            params["g1"], params["be1"], params["g2"], params["be2"])
    try:
        return build(True)(*args)
    except Exception:
        # pl.Buffered(1) not accepted on this jax/Mosaic build: fall back to
        # default (double-buffered) constant specs.
        return build(False)(*args)


def _reference(x, p, nhead, eps=1e-5):
    B, S, E = x.shape
    D = E // nhead
    joint = x @ p["wqkv"] + p["bqkv"][0]
    q = joint[..., :E].reshape(B, S, nhead, D)
    k = joint[..., E:2 * E].reshape(B, S, nhead, D)
    v = joint[..., 2 * E:].reshape(B, S, nhead, D)
    s = jnp.einsum("bqhd,bkhd->bhqk", q, k) / math.sqrt(D)
    a = jax.nn.softmax(s, axis=-1)
    o = jnp.einsum("bhqk,bkhd->bqhd", a, v).reshape(B, S, E)
    sa = o @ p["wo"] + p["bo"][0]

    def ln(y, g, b):
        mu = y.mean(-1, keepdims=True)
        var = ((y - mu) ** 2).mean(-1, keepdims=True)
        return (y - mu) * jax.lax.rsqrt(var + eps) * g[0] + b[0]

    h = ln(x + sa, p["g1"], p["be1"])
    ff = jnp.maximum(h @ p["w1"] + p["b1"][0], 0.0) @ p["w2"] + p["b2"][0]
    return ln(h + ff, p["g2"], p["be2"])


def init_params(key, embed_dim, dim_feedforward):
    ks = jax.random.split(key, 8)
    s = 0.05
    return {
        "wqkv": s * jax.random.normal(ks[0], (embed_dim, 3 * embed_dim), jnp.float32),
        "bqkv": s * jax.random.normal(ks[1], (1, 3 * embed_dim), jnp.float32),
        "wo":   s * jax.random.normal(ks[2], (embed_dim, embed_dim), jnp.float32),
        "bo":   s * jax.random.normal(ks[3], (1, embed_dim), jnp.float32),
        "w1":   s * jax.random.normal(ks[4], (embed_dim, dim_feedforward), jnp.float32),
        "b1":   s * jax.random.normal(ks[5], (1, dim_feedforward), jnp.float32),
        "w2":   s * jax.random.normal(ks[6], (dim_feedforward, embed_dim), jnp.float32),
        "b2":   s * jax.random.normal(ks[7], (1, embed_dim), jnp.float32),
        "g1":   jnp.ones((1, embed_dim), jnp.float32),
        "be1":  jnp.zeros((1, embed_dim), jnp.float32),
        "g2":   jnp.ones((1, embed_dim), jnp.float32),
        "be2":  jnp.zeros((1, embed_dim), jnp.float32),
    }


if __name__ == "__main__":
    def run_case(case_key, B, S, E, H, DFF, **kw):
        kx, kp = jax.random.split(case_key)
        x = jax.random.normal(kx, (B, S, E), jnp.float32)
        params = init_params(kp, E, DFF)
        out = transformer_encoder_layer(x, params, nhead=H, **kw)
        out = jax.block_until_ready(out)
        ref = _reference(x, params, H)
        assert out.shape == (B, S, E)
        max_err = float(jnp.max(jnp.abs(out - ref)))
        # bf16 matmul operands (f32 accumulation) => loosened tolerance.
        assert jnp.allclose(out, ref, atol=5e-2, rtol=5e-2), \
            f"mismatch vs reference (max abs err {max_err})"

    root = jax.random.PRNGKey(0)
    k1, k2 = jax.random.split(root)
    # Small demo shape (structure check).
    run_case(k1, B=2, S=8, E=32, H=4, DFF=64)
    # Lane-aligned shape that exercises the KV-tiled online-softmax attention
    # (2 KV chunks) and the dff-tiled FFN (2 dff chunks).
    run_case(k2, B=2, S=256, E=128, H=4, DFF=512, kv_chunk=128, dff_chunk=256)
    print("KERNEL_OK")
</pallas_src>

<mosaic_0001>
module attributes {stable_mosaic.version = 11 : i64} {
  func.func @_encoder_layer_kernel(%arg0: i32, %arg1: memref<1x8x32xf32, #tpu.memory_space<vmem>>, %arg2: memref<32x96xbf16, #tpu.memory_space<vmem>>, %arg3: memref<1x96xf32, #tpu.memory_space<vmem>>, %arg4: memref<32x32xbf16, #tpu.memory_space<vmem>>, %arg5: memref<1x32xf32, #tpu.memory_space<vmem>>, %arg6: memref<32x64xbf16, #tpu.memory_space<vmem>>, %arg7: memref<1x64xf32, #tpu.memory_space<vmem>>, %arg8: memref<64x32xbf16, #tpu.memory_space<vmem>>, %arg9: memref<1x32xf32, #tpu.memory_space<vmem>>, %arg10: memref<1x32xf32, #tpu.memory_space<vmem>>, %arg11: memref<1x32xf32, #tpu.memory_space<vmem>>, %arg12: memref<1x32xf32, #tpu.memory_space<vmem>>, %arg13: memref<1x32xf32, #tpu.memory_space<vmem>>, %arg14: memref<1x8x32xf32, #tpu.memory_space<vmem>>, %arg15: memref<8x32xf32, #tpu.memory_space<vmem>>) attributes {dimension_semantics = [#tpu.dimension_semantics<parallel>], iteration_bounds = array<i64: 2>, scalar_prefetch = 0 : i64, scratch_operands = 1 : i64, tpu.core_type = #tpu.core_type<tc>, window_params = [{transform_indices = @transform_0, window_bounds = array<i64: 1, 8, 32>}, {pipeline_mode = #tpu.pipeline_mode<synchronous>, transform_indices = @transform_1, window_bounds = array<i64: 32, 96>}, {pipeline_mode = #tpu.pipeline_mode<synchronous>, transform_indices = @transform_2, window_bounds = array<i64: 1, 96>}, {pipeline_mode = #tpu.pipeline_mode<synchronous>, transform_indices = @transform_3, window_bounds = array<i64: 32, 32>}, {pipeline_mode = #tpu.pipeline_mode<synchronous>, transform_indices = @transform_4, window_bounds = array<i64: 1, 32>}, {pipeline_mode = #tpu.pipeline_mode<synchronous>, transform_indices = @transform_5, window_bounds = array<i64: 32, 64>}, {pipeline_mode = #tpu.pipeline_mode<synchronous>, transform_indices = @transform_6, window_bounds = array<i64: 1, 64>}, {pipeline_mode = #tpu.pipeline_mode<synchronous>, transform_indices = @transform_7, window_bounds = array<i64: 64, 32>}, {pipeline_mode = #tpu.pipeline_mode<synchronous>, transform_indices = @transform_8, window_bounds = array<i64: 1, 32>}, {pipeline_mode = #tpu.pipeline_mode<synchronous>, transform_indices = @transform_9, window_bounds = array<i64: 1, 32>}, {pipeline_mode = #tpu.pipeline_mode<synchronous>, transform_indices = @transform_10, window_bounds = array<i64: 1, 32>}, {pipeline_mode = #tpu.pipeline_mode<synchronous>, transform_indices = @transform_11, window_bounds = array<i64: 1, 32>}, {pipeline_mode = #tpu.pipeline_mode<synchronous>, transform_indices = @transform_12, window_bounds = array<i64: 1, 32>}, {transform_indices = @transform_13, window_bounds = array<i64: 1, 8, 32>}]} {
    %c0 = arith.constant 0 : index
    %c0_0 = arith.constant 0 : index
    %c0_1 = arith.constant 0 : index
    %0 = vector.load %arg1[%c0, %c0_0, %c0_1] : memref<1x8x32xf32, #tpu.memory_space<vmem>>, vector<1x8x32xf32>
    %1 = vector.shape_cast %0 : vector<1x8x32xf32> to vector<8x32xf32>
    %2 = arith.truncf %1 : vector<8x32xf32> to vector<8x32xbf16>
    %c0_2 = arith.constant 0 : index
    %c0_3 = arith.constant 0 : index
    %3 = vector.load %arg2[%c0_2, %c0_3] : memref<32x96xbf16, #tpu.memory_space<vmem>>, vector<32x96xbf16>
    %cst = arith.constant dense<0.000000e+00> : vector<8x96xf32>
    %4 = tpu.matmul %2, %3, %cst {dimension_numbers = #tpu.dot_dimension_numbers<[1], [0], [0], [1], [0, 0, 1, 1], [], []>} : vector<8x32xbf16>, vector<32x96xbf16>, vector<8x96xf32> -> vector<8x96xf32>
    %c0_4 = arith.constant 0 : index
    %c0_5 = arith.constant 0 : index
    %5 = vector.load %arg3[%c0_4, %c0_5] : memref<1x96xf32, #tpu.memory_space<vmem>>, vector<1x96xf32>
    %6 = vector.shape_cast %5 : vector<1x96xf32> to vector<96xf32>
    %7 = vector.shape_cast %6 : vector<96xf32> to vector<1x96xf32>
    %8 = vector.broadcast %7 : vector<1x96xf32> to vector<8x96xf32>
    %9 = arith.addf %4, %8 : vector<8x96xf32>
    %10 = arith.truncf %9 : vector<8x96xf32> to vector<8x96xbf16>
    %11 = vector.extract_strided_slice %10 {offsets = [0, 0], sizes = [8, 32], strides = [1, 1]} : vector<8x96xbf16> to vector<8x32xbf16>
    %12 = vector.extract_strided_slice %10 {offsets = [0, 32], sizes = [8, 32], strides = [1, 1]} : vector<8x96xbf16> to vector<8x32xbf16>
    %13 = vector.extract_strided_slice %10 {offsets = [0, 64], sizes = [8, 32], strides = [1, 1]} : vector<8x96xbf16> to vector<8x32xbf16>
    %14 = vector.extract_strided_slice %11 {offsets = [0, 0], sizes = [8, 8], strides = [1, 1]} : vector<8x32xbf16> to vector<8x8xbf16>
    %15 = vector.shape_cast %14 : vector<8x8xbf16> to vector<1x8x8xbf16>
    %16 = vector.extract_strided_slice %12 {offsets = [0, 0], sizes = [8, 8], strides = [1, 1]} : vector<8x32xbf16> to vector<8x8xbf16>
    %17 = vector.shape_cast %16 : vector<8x8xbf16> to vector<1x8x8xbf16>
    %18 = vector.extract_strided_slice %13 {offsets = [0, 0], sizes = [8, 8], strides = [1, 1]} : vector<8x32xbf16> to vector<8x8xbf16>
    %19 = vector.shape_cast %18 : vector<8x8xbf16> to vector<1x8x8xbf16>
    "tpu.trace_start"() <{level = 10 : i32, message = "bqd,bkd->bqk"}> : () -> ()
    %cst_6 = arith.constant dense<0.000000e+00> : vector<1x8x8xf32>
    %20 = tpu.matmul %15, %17, %cst_6 {dimension_numbers = #tpu.dot_dimension_numbers<[2], [2], [1], [1], [0, 0, 0, 1, 1, 1], [0], [0]>} : vector<1x8x8xbf16>, vector<1x8x8xbf16>, vector<1x8x8xf32> -> vector<1x8x8xf32>
    "tpu.trace_stop"() : () -> ()
    %cst_7 = arith.constant 0.353553385 : f32
    %21 = vector.broadcast %cst_7 : f32 to vector<1x8x8xf32>
    %22 = arith.mulf %20, %21 : vector<1x8x8xf32>
    %cst_8 = arith.constant dense<0xFF800000> : vector<1x8xf32>
    %23 = vector.multi_reduction <maximumf>, %22, %cst_8 [2] : vector<1x8x8xf32> to vector<1x8xf32>
    %24 = vector.shape_cast %23 : vector<1x8xf32> to vector<1x8x1xf32>
    %25 = vector.broadcast %24 : vector<1x8x1xf32> to vector<1x8x8xf32>
    %26 = arith.subf %22, %25 : vector<1x8x8xf32>
    %27 = math.exp %26 : vector<1x8x8xf32>
    %cst_9 = arith.constant dense<0.000000e+00> : vector<1x8xf32>
    %28 = vector.multi_reduction <add>, %27, %cst_9 [2] : vector<1x8x8xf32> to vector<1x8xf32>
    %29 = vector.shape_cast %28 : vector<1x8xf32> to vector<1x8x1xf32>
    %30 = arith.truncf %27 : vector<1x8x8xf32> to vector<1x8x8xbf16>
    "tpu.trace_start"() <{level = 10 : i32, message = "bqk,bkd->bqd"}> : () -> ()
    %cst_10 = arith.constant dense<0.000000e+00> : vector<1x8x8xf32>
    %31 = tpu.matmul %30, %19, %cst_10 {dimension_numbers = #tpu.dot_dimension_numbers<[2], [1], [1], [2], [0, 0, 0, 1, 1, 2], [0], [0]>} : vector<1x8x8xbf16>, vector<1x8x8xbf16>, vector<1x8x8xf32> -> vector<1x8x8xf32>
    "tpu.trace_stop"() : () -> ()
    %32 = vector.broadcast %29 : vector<1x8x1xf32> to vector<1x8x8xf32>
    %33 = arith.divf %31, %32 : vector<1x8x8xf32>
    %34 = vector.shape_cast %33 : vector<1x8x8xf32> to vector<8x8xf32>
    %c0_11 = arith.constant 0 : index
    %c0_12 = arith.constant 0 : index
    %35 = vector.load %arg15[%c0_11, %c0_12] : memref<8x32xf32, #tpu.memory_space<vmem>>, vector<8x8xf32>
    tpu.vector_store %arg15[%c0_11, %c0_12], %34 {strides = array<i32>} : memref<8x32xf32, #tpu.memory_space<vmem>>, vector<8x8xf32>,
    %36 = vector.extract_strided_slice %11 {offsets = [0, 8], sizes = [8, 8], strides = [1, 1]} : vector<8x32xbf16> to vector<8x8xbf16>
    %37 = vector.shape_cast %36 : vector<8x8xbf16> to vector<1x8x8xbf16>
    %38 = vector.extract_strided_slice %12 {offsets = [0, 8], sizes = [8, 8], strides = [1, 1]} : vector<8x32xbf16> to vector<8x8xbf16>
    %39 = vector.shape_cast %38 : vector<8x8xbf16> to vector<1x8x8xbf16>
    %40 = vector.extract_strided_slice %13 {offsets = [0, 8], sizes = [8, 8], strides = [1, 1]} : vector<8x32xbf16> to vector<8x8xbf16>
    %41 = vector.shape_cast %40 : vector<8x8xbf16> to vector<1x8x8xbf16>
    "tpu.trace_start"() <{level = 10 : i32, message = "bqd,bkd->bqk"}> : () -> ()
    %cst_13 = arith.constant dense<0.000000e+00> : vector<1x8x8xf32>
    %42 = tpu.matmul %37, %39, %cst_13 {dimension_numbers = #tpu.dot_dimension_numbers<[2], [2], [1], [1], [0, 0, 0, 1, 1, 1], [0], [0]>} : vector<1x8x8xbf16>, vector<1x8x8xbf16>, vector<1x8x8xf32> -> vector<1x8x8xf32>
    "tpu.trace_stop"() : () -> ()
    %cst_14 = arith.constant 0.353553385 : f32
    %43 = vector.broadcast %cst_14 : f32 to vector<1x8x8xf32>
    %44 = arith.mulf %42, %43 : vector<1x8x8xf32>
    %cst_15 = arith.constant dense<0xFF800000> : vector<1x8xf32>
    %45 = vector.multi_reduction <maximumf>, %44, %cst_15 [2] : vector<1x8x8xf32> to vector<1x8xf32>
    %46 = vector.shape_cast %45 : vector<1x8xf32> to vector<1x8x1xf32>
    %47 = vector.broadcast %46 : vector<1x8x1xf32> to vector<1x8x8xf32>
    %48 = arith.subf %44, %47 : vector<1x8x8xf32>
    %49 = math.exp %48 : vector<1x8x8xf32>
    %cst_16 = arith.constant dense<0.000000e+00> : vector<1x8xf32>
    %50 = vector.multi_reduction <add>, %49, %cst_16 [2] : vector<1x8x8xf32> to vector<1x8xf32>
    %51 = vector.shape_cast %50 : vector<1x8xf32> to vector<1x8x1xf32>
    %52 = arith.truncf %49 : vector<1x8x8xf32> to vector<1x8x8xbf16>
    "tpu.trace_start"() <{level = 10 : i32, message = "bqk,bkd->bqd"}> : () -> ()
    %cst_17 = arith.constant dense<0.000000e+00> : vector<1x8x8xf32>
    %53 = tpu.matmul %52, %41, %cst_17 {dimension_numbers = #tpu.dot_dimension_numbers<[2], [1], [1], [2], [0, 0, 0, 1, 1, 2], [0], [0]>} : vector<1x8x8xbf16>, vector<1x8x8xbf16>, vector<1x8x8xf32> -> vector<1x8x8xf32>
    "tpu.trace_stop"() : () -> ()
    %54 = vector.broadcast %51 : vector<1x8x1xf32> to vector<1x8x8xf32>
    %55 = arith.divf %53, %54 : vector<1x8x8xf32>
    %56 = vector.shape_cast %55 : vector<1x8x8xf32> to vector<8x8xf32>
    %c0_18 = arith.constant 0 : index
    %c8 = arith.constant 8 : index
    %57 = vector.load %arg15[%c0_18, %c8] : memref<8x32xf32, #tpu.memory_space<vmem>>, vector<8x8xf32>
    tpu.vector_store %arg15[%c0_18, %c8], %56 {strides = array<i32>} : memref<8x32xf32, #tpu.memory_space<vmem>>, vector<8x8xf32>,
    %58 = vector.extract_strided_slice %11 {offsets = [0, 16], sizes = [8, 8], strides = [1, 1]} : vector<8x32xbf16> to vector<8x8xbf16>
    %59 = vector.shape_cast %58 : vector<8x8xbf16> to vector<1x8x8xbf16>
    %60 = vector.extract_strided_slice %12 {offsets = [0, 16], sizes = [8, 8], strides = [1, 1]} : vector<8x32xbf16> to vector<8x8xbf16>
    %61 = vector.shape_cast %60 : vector<8x8xbf16> to vector<1x8x8xbf16>
    %62 = vector.extract_strided_slice %13 {offsets = [0, 16], sizes = [8, 8], strides = [1, 1]} : vector<8x32xbf16> to vector<8x8xbf16>
    %63 = vector.shape_cast %62 : vector<8x8xbf16> to vector<1x8x8xbf16>
    "tpu.trace_start"() <{level = 10 : i32, message = "bqd,bkd->bqk"}> : () -> ()
    %cst_19 = arith.constant dense<0.000000e+00> : vector<1x8x8xf32>
    %64 = tpu.matmul %59, %61, %cst_19 {dimension_numbers = #tpu.dot_dimension_numbers<[2], [2], [1], [1], [0, 0, 0, 1, 1, 1], [0], [0]>} : vector<1x8x8xbf16>, vector<1x8x8xbf16>, vector<1x8x8xf32> -> vector<1x8x8xf32>
    "tpu.trace_stop"() : () -> ()
    %cst_20 = arith.constant 0.353553385 : f32
    %65 = vector.broadcast %cst_20 : f32 to vector<1x8x8xf32>
    %66 = arith.mulf %64, %65 : vector<1x8x8xf32>
    %cst_21 = arith.constant dense<0xFF800000> : vector<1x8xf32>
    %67 = vector.multi_reduction <maximumf>, %66, %cst_21 [2] : vector<1x8x8xf32> to vector<1x8xf32>
    %68 = vector.shape_cast %67 : vector<1x8xf32> to vector<1x8x1xf32>
    %69 = vector.broadcast %68 : vector<1x8x1xf32> to vector<1x8x8xf32>
    %70 = arith.subf %66, %69 : vector<1x8x8xf32>
    %71 = math.exp %70 : vector<1x8x8xf32>
    %cst_22 = arith.constant dense<0.000000e+00> : vector<1x8xf32>
    %72 = vector.multi_reduction <add>, %71, %cst_22 [2] : vector<1x8x8xf32> to vector<1x8xf32>
    %73 = vector.shape_cast %72 : vector<1x8xf32> to vector<1x8x1xf32>
    %74 = arith.truncf %71 : vector<1x8x8xf32> to vector<1x8x8xbf16>
    "tpu.trace_start"() <{level = 10 : i32, message = "bqk,bkd->bqd"}> : () -> ()
    %cst_23 = arith.constant dense<0.000000e+00> : vector<1x8x8xf32>
    %75 = tpu.matmul %74, %63, %cst_23 {dimension_numbers = #tpu.dot_dimension_numbers<[2], [1], [1], [2], [0, 0, 0, 1, 1, 2], [0], [0]>} : vector<1x8x8xbf16>, vector<1x8x8xbf16>, vector<1x8x8xf32> -> vector<1x8x8xf32>
    "tpu.trace_stop"() : () -> ()
    %76 = vector.broadcast %73 : vector<1x8x1xf32> to vector<1x8x8xf32>
    %77 = arith.divf %75, %76 : vector<1x8x8xf32>
    %78 = vector.shape_cast %77 : vector<1x8x8xf32> to vector<8x8xf32>
    %c0_24 = arith.constant 0 : index
    %c16 = arith.constant 16 : index
    %79 = vector.load %arg15[%c0_24, %c16] : memref<8x32xf32, #tpu.memory_space<vmem>>, vector<8x8xf32>
    tpu.vector_store %arg15[%c0_24, %c16], %78 {strides = array<i32>} : memref<8x32xf32, #tpu.memory_space<vmem>>, vector<8x8xf32>,
    %80 = vector.extract_strided_slice %11 {offsets = [0, 24], sizes = [8, 8], strides = [1, 1]} : vector<8x32xbf16> to vector<8x8xbf16>
    %81 = vector.shape_cast %80 : vector<8x8xbf16> to vector<1x8x8xbf16>
    %82 = vector.extract_strided_slice %12 {offsets = [0, 24], sizes = [8, 8], strides = [1, 1]} : vector<8x32xbf16> to vector<8x8xbf16>
    %83 = vector.shape_cast %82 : vector<8x8xbf16> to vector<1x8x8xbf16>
    %84 = vector.extract_strided_slice %13 {offsets = [0, 24], sizes = [8, 8], strides = [1, 1]} : vector<8x32xbf16> to vector<8x8xbf16>
    %85 = vector.shape_cast %84 : vector<8x8xbf16> to vector<1x8x8xbf16>
    "tpu.trace_start"() <{level = 10 : i32, message = "bqd,bkd->bqk"}> : () -> ()
    %cst_25 = arith.constant dense<0.000000e+00> : vector<1x8x8xf32>
    %86 = tpu.matmul %81, %83, %cst_25 {dimension_numbers = #tpu.dot_dimension_numbers<[2], [2], [1], [1], [0, 0, 0, 1, 1, 1], [0], [0]>} : vector<1x8x8xbf16>, vector<1x8x8xbf16>, vector<1x8x8xf32> -> vector<1x8x8xf32>
    "tpu.trace_stop"() : () -> ()
    %cst_26 = arith.constant 0.353553385 : f32
    %87 = vector.broadcast %cst_26 : f32 to vector<1x8x8xf32>
    %88 = arith.mulf %86, %87 : vector<1x8x8xf32>
    %cst_27 = arith.constant dense<0xFF800000> : vector<1x8xf32>
    %89 = vector.multi_reduction <maximumf>, %88, %cst_27 [2] : vector<1x8x8xf32> to vector<1x8xf32>
    %90 = vector.shape_cast %89 : vector<1x8xf32> to vector<1x8x1xf32>
    %91 = vector.broadcast %90 : vector<1x8x1xf32> to vector<1x8x8xf32>
    %92 = arith.subf %88, %91 : vector<1x8x8xf32>
    %93 = math.exp %92 : vector<1x8x8xf32>
    %cst_28 = arith.constant dense<0.000000e+00> : vector<1x8xf32>
    %94 = vector.multi_reduction <add>, %93, %cst_28 [2] : vector<1x8x8xf32> to vector<1x8xf32>
    %95 = vector.shape_cast %94 : vector<1x8xf32> to vector<1x8x1xf32>
    %96 = arith.truncf %93 : vector<1x8x8xf32> to vector<1x8x8xbf16>
    "tpu.trace_start"() <{level = 10 : i32, message = "bqk,bkd->bqd"}> : () -> ()
    %cst_29 = arith.constant dense<0.000000e+00> : vector<1x8x8xf32>
    %97 = tpu.matmul %96, %85, %cst_29 {dimension_numbers = #tpu.dot_dimension_numbers<[2], [1], [1], [2], [0, 0, 0, 1, 1, 2], [0], [0]>} : vector<1x8x8xbf16>, vector<1x8x8xbf16>, vector<1x8x8xf32> -> vector<1x8x8xf32>
    "tpu.trace_stop"() : () -> ()
    %98 = vector.broadcast %95 : vector<1x8x1xf32> to vector<1x8x8xf32>
    %99 = arith.divf %97, %98 : vector<1x8x8xf32>
    %100 = vector.shape_cast %99 : vector<1x8x8xf32> to vector<8x8xf32>
    %c0_30 = arith.constant 0 : index
    %c24 = arith.constant 24 : index
    %101 = vector.load %arg15[%c0_30, %c24] : memref<8x32xf32, #tpu.memory_space<vmem>>, vector<8x8xf32>
    tpu.vector_store %arg15[%c0_30, %c24], %100 {strides = array<i32>} : memref<8x32xf32, #tpu.memory_space<vmem>>, vector<8x8xf32>,
    %c0_31 = arith.constant 0 : index
    %c0_32 = arith.constant 0 : index
    %102 = vector.load %arg15[%c0_31, %c0_32] : memref<8x32xf32, #tpu.memory_space<vmem>>, vector<8x32xf32>
    %103 = arith.truncf %102 : vector<8x32xf32> to vector<8x32xbf16>
    %c0_33 = arith.constant 0 : index
    %c0_34 = arith.constant 0 : index
    %104 = vector.load %arg4[%c0_33, %c0_34] : memref<32x32xbf16, #tpu.memory_space<vmem>>, vector<32x32xbf16>
    %cst_35 = arith.constant dense<0.000000e+00> : vector<8x32xf32>
    %105 = tpu.matmul %103, %104, %cst_35 {dimension_numbers = #tpu.dot_dimension_numbers<[1], [0], [0], [1], [0, 0, 1, 1], [], []>} : vector<8x32xbf16>, vector<32x32xbf16>, vector<8x32xf32> -> vector<8x32xf32>
    %c0_36 = arith.constant 0 : index
    %c0_37 = arith.constant 0 : index
    %106 = vector.load %arg5[%c0_36, %c0_37] : memref<1x32xf32, #tpu.memory_space<vmem>>, vector<1x32xf32>
    %107 = vector.shape_cast %106 : vector<1x32xf32> to vector<32xf32>
    %108 = vector.shape_cast %107 : vector<32xf32> to vector<1x32xf32>
    %109 = vector.broadcast %108 : vector<1x32xf32> to vector<8x32xf32>
    %110 = arith.addf %105, %109 : vector<8x32xf32>
    %111 = arith.addf %1, %110 : vector<8x32xf32>
    %cst_38 = arith.constant dense<0.000000e+00> : vector<8xf32>
    %112 = vector.multi_reduction <add>, %111, %cst_38 [1] : vector<8x32xf32> to vector<8xf32>
    %113 = vector.shape_cast %112 : vector<8xf32> to vector<8x1xf32>
    %cst_39 = arith.constant 3.200000e+01 : f32
    %114 = vector.broadcast %cst_39 : f32 to vector<8x1xf32>
    %115 = arith.divf %113, %114 : vector<8x1xf32>
    %116 = vector.broadcast %115 : vector<8x1xf32> to vector<8x32xf32>
    %117 = arith.subf %111, %116 : vector<8x32xf32>
    %118 = arith.mulf %117, %117 : vector<8x32xf32>
    %cst_40 = arith.constant dense<0.000000e+00> : vector<8xf32>
    %119 = vector.multi_reduction <add>, %118, %cst_40 [1] : vector<8x32xf32> to vector<8xf32>
    %120 = vector.shape_cast %119 : vector<8xf32> to vector<8x1xf32>
    %cst_41 = arith.constant 3.200000e+01 : f32
    %121 = vector.broadcast %cst_41 : f32 to vector<8x1xf32>
    %122 = arith.divf %120, %121 : vector<8x1xf32>
    %123 = vector.broadcast %115 : vector<8x1xf32> to vector<8x32xf32>
    %124 = arith.subf %111, %123 : vector<8x32xf32>
    %cst_42 = arith.constant 9.99999974E-6 : f32
    %125 = vector.broadcast %cst_42 : f32 to vector<8x1xf32>
    %126 = arith.addf %122, %125 : vector<8x1xf32>
    %127 = math.rsqrt %126 : vector<8x1xf32>
    %128 = vector.broadcast %127 : vector<8x1xf32> to vector<8x32xf32>
    %129 = arith.mulf %124, %128 : vector<8x32xf32>
    %c0_43 = arith.constant 0 : index
    %c0_44 = arith.constant 0 : index
    %130 = vector.load %arg10[%c0_43, %c0_44] : memref<1x32xf32, #tpu.memory_space<vmem>>, vector<1x32xf32>
    %131 = vector.shape_cast %130 : vector<1x32xf32> to vector<32xf32>
    %132 = vector.shape_cast %131 : vector<32xf32> to vector<1x32xf32>
    %133 = vector.broadcast %132 : vector<1x32xf32> to vector<8x32xf32>
    %134 = arith.mulf %129, %133 : vector<8x32xf32>
    %c0_45 = arith.constant 0 : index
    %c0_46 = arith.constant 0 : index
    %135 = vector.load %arg11[%c0_45, %c0_46] : memref<1x32xf32, #tpu.memory_space<vmem>>, vector<1x32xf32>
    %136 = vector.shape_cast %135 : vector<1x32xf32> to vector<32xf32>
    %137 = vector.shape_cast %136 : vector<32xf32> to vector<1x32xf32>
    %138 = vector.broadcast %137 : vector<1x32xf32> to vector<8x32xf32>
    %139 = arith.addf %134, %138 : vector<8x32xf32>
    %140 = arith.truncf %139 : vector<8x32xf32> to vector<8x32xbf16>
    %c0_47 = arith.constant 0 : index
    %c0_48 = arith.constant 0 : index
    %141 = vector.load %arg6[%c0_47, %c0_48] : memref<32x64xbf16, #tpu.memory_space<vmem>>, vector<32x64xbf16>
    %cst_49 = arith.constant dense<0.000000e+00> : vector<8x64xf32>
    %142 = tpu.matmul %140, %141, %cst_49 {dimension_numbers = #tpu.dot_dimension_numbers<[1], [0], [0], [1], [0, 0, 1, 1], [], []>} : vector<8x32xbf16>, vector<32x64xbf16>, vector<8x64xf32> -> vector<8x64xf32>
    %c0_50 = arith.constant 0 : index
    %c0_51 = arith.constant 0 : index
    %143 = vector.load %arg7[%c0_50, %c0_51] : memref<1x64xf32, #tpu.memory_space<vmem>>, vector<1x64xf32>
    %144 = vector.shape_cast %143 : vector<1x64xf32> to vector<64xf32>
    %145 = vector.shape_cast %144 : vector<64xf32> to vector<1x64xf32>
    %146 = vector.broadcast %145 : vector<1x64xf32> to vector<8x64xf32>
    %147 = arith.addf %142, %146 : vector<8x64xf32>
    %cst_52 = arith.constant 0.000000e+00 : f32
    %148 = vector.broadcast %cst_52 : f32 to vector<8x64xf32>
    %149 = arith.maximumf %147, %148 : vector<8x64xf32>
    %150 = arith.truncf %149 : vector<8x64xf32> to vector<8x64xbf16>
    %c0_53 = arith.constant 0 : index
    %c0_54 = arith.constant 0 : index
    %151 = vector.load %arg8[%c0_53, %c0_54] : memref<64x32xbf16, #tpu.memory_space<vmem>>, vector<64x32xbf16>
    %cst_55 = arith.constant dense<0.000000e+00> : vector<8x32xf32>
    %152 = tpu.matmul %150, %151, %cst_55 {dimension_numbers = #tpu.dot_dimension_numbers<[1], [0], [0], [1], [0, 0, 1, 1], [], []>} : vector<8x64xbf16>, vector<64x32xbf16>, vector<8x32xf32> -> vector<8x32xf32>
    %c0_56 = arith.constant 0 : index
    %c0_57 = arith.constant 0 : index
    %153 = vector.load %arg9[%c0_56, %c0_57] : memref<1x32xf32, #tpu.memory_space<vmem>>, vector<1x32xf32>
    %154 = vector.shape_cast %153 : vector<1x32xf32> to vector<32xf32>
    %155 = vector.shape_cast %154 : vector<32xf32> to vector<1x32xf32>
    %156 = vector.broadcast %155 : vector<1x32xf32> to vector<8x32xf32>
    %157 = arith.addf %152, %156 : vector<8x32xf32>
    %158 = arith.addf %139, %157 : vector<8x32xf32>
    %cst_58 = arith.constant dense<0.000000e+00> : vector<8xf32>
    %159 = vector.multi_reduction <add>, %158, %cst_58 [1] : vector<8x32xf32> to vector<8xf32>
    %160 = vector.shape_cast %159 : vector<8xf32> to vector<8x1xf32>
    %cst_59 = arith.constant 3.200000e+01 : f32
    %161 = vector.broadcast %cst_59 : f32 to vector<8x1xf32>
    %162 = arith.divf %160, %161 : vector<8x1xf32>
    %163 = vector.broadcast %162 : vector<8x1xf32> to vector<8x32xf32>
    %164 = arith.subf %158, %163 : vector<8x32xf32>
    %165 = arith.mulf %164, %164 : vector<8x32xf32>
    %cst_60 = arith.constant dense<0.000000e+00> : vector<8xf32>
    %166 = vector.multi_reduction <add>, %165, %cst_60 [1] : vector<8x32xf32> to vector<8xf32>
    %167 = vector.shape_cast %166 : vector<8xf32> to vector<8x1xf32>
    %cst_61 = arith.constant 3.200000e+01 : f32
    %168 = vector.broadcast %cst_61 : f32 to vector<8x1xf32>
    %169 = arith.divf %167, %168 : vector<8x1xf32>
    %170 = vector.broadcast %162 : vector<8x1xf32> to vector<8x32xf32>
    %171 = arith.subf %158, %170 : vector<8x32xf32>
    %cst_62 = arith.constant 9.99999974E-6 : f32
    %172 = vector.broadcast %cst_62 : f32 to vector<8x1xf32>
    %173 = arith.addf %169, %172 : vector<8x1xf32>
    %174 = math.rsqrt %173 : vector<8x1xf32>
    %175 = vector.broadcast %174 : vector<8x1xf32> to vector<8x32xf32>
    %176 = arith.mulf %171, %175 : vector<8x32xf32>
    %c0_63 = arith.constant 0 : index
    %c0_64 = arith.constant 0 : index
    %177 = vector.load %arg12[%c0_63, %c0_64] : memref<1x32xf32, #tpu.memory_space<vmem>>, vector<1x32xf32>
    %178 = vector.shape_cast %177 : vector<1x32xf32> to vector<32xf32>
    %179 = vector.shape_cast %178 : vector<32xf32> to vector<1x32xf32>
    %180 = vector.broadcast %179 : vector<1x32xf32> to vector<8x32xf32>
    %181 = arith.mulf %176, %180 : vector<8x32xf32>
    %c0_65 = arith.constant 0 : index
    %c0_66 = arith.constant 0 : index
    %182 = vector.load %arg13[%c0_65, %c0_66] : memref<1x32xf32, #tpu.memory_space<vmem>>, vector<1x32xf32>
    %183 = vector.shape_cast %182 : vector<1x32xf32> to vector<32xf32>
    %184 = vector.shape_cast %183 : vector<32xf32> to vector<1x32xf32>
    %185 = vector.broadcast %184 : vector<1x32xf32> to vector<8x32xf32>
    %186 = arith.addf %181, %185 : vector<8x32xf32>
    %187 = vector.shape_cast %186 : vector<8x32xf32> to vector<1x8x32xf32>
    %c0_67 = arith.constant 0 : index
    %c0_68 = arith.constant 0 : index
    %c0_69 = arith.constant 0 : index
    %188 = vector.load %arg14[%c0_67, %c0_68, %c0_69] : memref<1x8x32xf32, #tpu.memory_space<vmem>>, vector<1x8x32xf32>
    tpu.vector_store %arg14[%c0_67, %c0_68, %c0_69], %187 {strides = array<i32>} : memref<1x8x32xf32, #tpu.memory_space<vmem>>, vector<1x8x32xf32>,
    return
  }
  func.func @transform_0(%arg0: i32) -> (i32, i32, i32) {
    %c0_i32 = arith.constant 0 : i32
    %c0_i32_0 = arith.constant 0 : i32
    %c0_i32_1 = arith.constant 0 : i32
    return %arg0, %c0_i32, %c0_i32_0 : i32, i32, i32
  }
  func.func @transform_1(%arg0: i32) -> (i32, i32) {
    %c0_i32 = arith.constant 0 : i32
    %c0_i32_0 = arith.constant 0 : i32
    %c0_i32_1 = arith.constant 0 : i32
    return %c0_i32, %c0_i32_0 : i32, i32
  }
  func.func @transform_2(%arg0: i32) -> (i32, i32) {
    %c0_i32 = arith.constant 0 : i32
    %c0_i32_0 = arith.constant 0 : i32
    %c0_i32_1 = arith.constant 0 : i32
    return %c0_i32, %c0_i32_0 : i32, i32
  }
  func.func @transform_3(%arg0: i32) -> (i32, i32) {
    %c0_i32 = arith.constant 0 : i32
    %c0_i32_0 = arith.constant 0 : i32
    %c0_i32_1 = arith.constant 0 : i32
    return %c0_i32, %c0_i32_0 : i32, i32
  }
  func.func @transform_4(%arg0: i32) -> (i32, i32) {
    %c0_i32 = arith.constant 0 : i32
    %c0_i32_0 = arith.constant 0 : i32
    %c0_i32_1 = arith.constant 0 : i32
    return %c0_i32, %c0_i32_0 : i32, i32
  }
  func.func @transform_5(%arg0: i32) -> (i32, i32) {
    %c0_i32 = arith.constant 0 : i32
    %c0_i32_0 = arith.constant 0 : i32
    %c0_i32_1 = arith.constant 0 : i32
    return %c0_i32, %c0_i32_0 : i32, i32
  }
  func.func @transform_6(%arg0: i32) -> (i32, i32) {
    %c0_i32 = arith.constant 0 : i32
    %c0_i32_0 = arith.constant 0 : i32
    %c0_i32_1 = arith.constant 0 : i32
    return %c0_i32, %c0_i32_0 : i32, i32
  }
  func.func @transform_7(%arg0: i32) -> (i32, i32) {
    %c0_i32 = arith.constant 0 : i32
    %c0_i32_0 = arith.constant 0 : i32
    %c0_i32_1 = arith.constant 0 : i32
    return %c0_i32, %c0_i32_0 : i32, i32
  }
  func.func @transform_8(%arg0: i32) -> (i32, i32) {
    %c0_i32 = arith.constant 0 : i32
    %c0_i32_0 = arith.constant 0 : i32
    %c0_i32_1 = arith.constant 0 : i32
    return %c0_i32, %c0_i32_0 : i32, i32
  }
  func.func @transform_9(%arg0: i32) -> (i32, i32) {
    %c0_i32 = arith.constant 0 : i32
    %c0_i32_0 = arith.constant 0 : i32
    %c0_i32_1 = arith.constant 0 : i32
    return %c0_i32, %c0_i32_0 : i32, i32
  }
  func.func @transform_10(%arg0: i32) -> (i32, i32) {
    %c0_i32 = arith.constant 0 : i32
    %c0_i32_0 = arith.constant 0 : i32
    %c0_i32_1 = arith.constant 0 : i32
    return %c0_i32, %c0_i32_0 : i32, i32
  }
  func.func @transform_11(%arg0: i32) -> (i32, i32) {
    %c0_i32 = arith.constant 0 : i32
    %c0_i32_0 = arith.constant 0 : i32
    %c0_i32_1 = arith.constant 0 : i32
    return %c0_i32, %c0_i32_0 : i32, i32
  }
  func.func @transform_12(%arg0: i32) -> (i32, i32) {
    %c0_i32 = arith.constant 0 : i32
    %c0_i32_0 = arith.constant 0 : i32
    %c0_i32_1 = arith.constant 0 : i32
    return %c0_i32, %c0_i32_0 : i32, i32
  }
  func.func @transform_13(%arg0: i32) -> (i32, i32, i32) {
    %c0_i32 = arith.constant 0 : i32
    %c0_i32_0 = arith.constant 0 : i32
    %c0_i32_1 = arith.constant 0 : i32
    return %arg0, %c0_i32, %c0_i32_0 : i32, i32, i32
  }
}

module attributes {stable_mosaic.version = 11 : i64} {
  func.func @_encoder_layer_kernel(%arg0: i32, %arg1: memref<1x8x32xf32, #tpu.memory_space<vmem>>, %arg2: memref<32x96xbf16, #tpu.memory_space<vmem>>, %arg3: memref<1x96xf32, #tpu.memory_space<vmem>>, %arg4: memref<32x32xbf16, #tpu.memory_space<vmem>>, %arg5: memref<1x32xf32, #tpu.memory_space<vmem>>, %arg6: memref<32x64xbf16, #tpu.memory_space<vmem>>, %arg7: memref<1x64xf32, #tpu.memory_space<vmem>>, %arg8: memref<64x32xbf16, #tpu.memory_space<vmem>>, %arg9: memref<1x32xf32, #tpu.memory_space<vmem>>, %arg10: memref<1x32xf32, #tpu.memory_space<vmem>>, %arg11: memref<1x32xf32, #tpu.memory_space<vmem>>, %arg12: memref<1x32xf32, #tpu.memory_space<vmem>>, %arg13: memref<1x32xf32, #tpu.memory_space<vmem>>, %arg14: memref<1x8x32xf32, #tpu.memory_space<vmem>>, %arg15: memref<8x32xf32, #tpu.memory_space<vmem>>) attributes {dimension_semantics = [#tpu.dimension_semantics<parallel>], iteration_bounds = array<i64: 2>, scalar_prefetch = 0 : i64, scratch_operands = 1 : i64, tpu.core_type = #tpu.core_type<tc>, window_params = [{transform_indices = @transform_0, window_bounds = array<i64: 1, 8, 32>}, {pipeline_mode = #tpu.pipeline_mode<synchronous>, transform_indices = @transform_1, window_bounds = array<i64: 32, 96>}, {pipeline_mode = #tpu.pipeline_mode<synchronous>, transform_indices = @transform_2, window_bounds = array<i64: 1, 96>}, {pipeline_mode = #tpu.pipeline_mode<synchronous>, transform_indices = @transform_3, window_bounds = array<i64: 32, 32>}, {pipeline_mode = #tpu.pipeline_mode<synchronous>, transform_indices = @transform_4, window_bounds = array<i64: 1, 32>}, {pipeline_mode = #tpu.pipeline_mode<synchronous>, transform_indices = @transform_5, window_bounds = array<i64: 32, 64>}, {pipeline_mode = #tpu.pipeline_mode<synchronous>, transform_indices = @transform_6, window_bounds = array<i64: 1, 64>}, {pipeline_mode = #tpu.pipeline_mode<synchronous>, transform_indices = @transform_7, window_bounds = array<i64: 64, 32>}, {pipeline_mode = #tpu.pipeline_mode<synchronous>, transform_indices = @transform_8, window_bounds = array<i64: 1, 32>}, {pipeline_mode = #tpu.pipeline_mode<synchronous>, transform_indices = @transform_9, window_bounds = array<i64: 1, 32>}, {pipeline_mode = #tpu.pipeline_mode<synchronous>, transform_indices = @transform_10, window_bounds = array<i64: 1, 32>}, {pipeline_mode = #tpu.pipeline_mode<synchronous>, transform_indices = @transform_11, window_bounds = array<i64: 1, 32>}, {pipeline_mode = #tpu.pipeline_mode<synchronous>, transform_indices = @transform_12, window_bounds = array<i64: 1, 32>}, {transform_indices = @transform_13, window_bounds = array<i64: 1, 8, 32>}]} {
    %c0 = arith.constant 0 : index
    %c0_0 = arith.constant 0 : index
    %c0_1 = arith.constant 0 : index
    %0 = vector.load %arg1[%c0, %c0_0, %c0_1] : memref<1x8x32xf32, #tpu.memory_space<vmem>>, vector<1x8x32xf32>
    %1 = vector.shape_cast %0 : vector<1x8x32xf32> to vector<8x32xf32>
    %2 = arith.truncf %1 : vector<8x32xf32> to vector<8x32xbf16>
    %c0_2 = arith.constant 0 : index
    %c0_3 = arith.constant 0 : index
    %3 = vector.load %arg2[%c0_2, %c0_3] : memref<32x96xbf16, #tpu.memory_space<vmem>>, vector<32x96xbf16>
    %cst = arith.constant dense<0.000000e+00> : vector<8x96xf32>
    %4 = tpu.matmul %2, %3, %cst {dimension_numbers = #tpu.dot_dimension_numbers<[1], [0], [0], [1], [0, 0, 1, 1], [], []>} : vector<8x32xbf16>, vector<32x96xbf16>, vector<8x96xf32> -> vector<8x96xf32>
    %c0_4 = arith.constant 0 : index
    %c0_5 = arith.constant 0 : index
    %5 = vector.load %arg3[%c0_4, %c0_5] : memref<1x96xf32, #tpu.memory_space<vmem>>, vector<1x96xf32>
    %6 = vector.shape_cast %5 : vector<1x96xf32> to vector<96xf32>
    %7 = vector.shape_cast %6 : vector<96xf32> to vector<1x96xf32>
    %8 = vector.broadcast %7 : vector<1x96xf32> to vector<8x96xf32>
    %9 = arith.addf %4, %8 : vector<8x96xf32>
    %10 = arith.truncf %9 : vector<8x96xf32> to vector<8x96xbf16>
    %11 = vector.extract_strided_slice %10 {offsets = [0, 0], sizes = [8, 32], strides = [1, 1]} : vector<8x96xbf16> to vector<8x32xbf16>
    %12 = vector.extract_strided_slice %10 {offsets = [0, 32], sizes = [8, 32], strides = [1, 1]} : vector<8x96xbf16> to vector<8x32xbf16>
    %13 = vector.extract_strided_slice %10 {offsets = [0, 64], sizes = [8, 32], strides = [1, 1]} : vector<8x96xbf16> to vector<8x32xbf16>
    %14 = vector.extract_strided_slice %11 {offsets = [0, 0], sizes = [8, 8], strides = [1, 1]} : vector<8x32xbf16> to vector<8x8xbf16>
    %15 = vector.shape_cast %14 : vector<8x8xbf16> to vector<1x8x8xbf16>
    %16 = vector.extract_strided_slice %12 {offsets = [0, 0], sizes = [8, 8], strides = [1, 1]} : vector<8x32xbf16> to vector<8x8xbf16>
    %17 = vector.shape_cast %16 : vector<8x8xbf16> to vector<1x8x8xbf16>
    %18 = vector.extract_strided_slice %13 {offsets = [0, 0], sizes = [8, 8], strides = [1, 1]} : vector<8x32xbf16> to vector<8x8xbf16>
    %19 = vector.shape_cast %18 : vector<8x8xbf16> to vector<1x8x8xbf16>
    "tpu.trace_start"() <{level = 10 : i32, message = "bqd,bkd->bqk"}> : () -> ()
    %cst_6 = arith.constant dense<0.000000e+00> : vector<1x8x8xf32>
    %20 = tpu.matmul %15, %17, %cst_6 {dimension_numbers = #tpu.dot_dimension_numbers<[2], [2], [1], [1], [0, 0, 0, 1, 1, 1], [0], [0]>} : vector<1x8x8xbf16>, vector<1x8x8xbf16>, vector<1x8x8xf32> -> vector<1x8x8xf32>
    "tpu.trace_stop"() : () -> ()
    %cst_7 = arith.constant 0.353553385 : f32
    %21 = vector.broadcast %cst_7 : f32 to vector<1x8x8xf32>
    %22 = arith.mulf %20, %21 : vector<1x8x8xf32>
    %cst_8 = arith.constant dense<0xFF800000> : vector<1x8xf32>
    %23 = vector.multi_reduction <maximumf>, %22, %cst_8 [2] : vector<1x8x8xf32> to vector<1x8xf32>
    %24 = vector.shape_cast %23 : vector<1x8xf32> to vector<1x8x1xf32>
    %25 = vector.broadcast %24 : vector<1x8x1xf32> to vector<1x8x8xf32>
    %26 = arith.subf %22, %25 : vector<1x8x8xf32>
    %27 = math.exp %26 : vector<1x8x8xf32>
    %cst_9 = arith.constant dense<0.000000e+00> : vector<1x8xf32>
    %28 = vector.multi_reduction <add>, %27, %cst_9 [2] : vector<1x8x8xf32> to vector<1x8xf32>
    %29 = vector.shape_cast %28 : vector<1x8xf32> to vector<1x8x1xf32>
    %30 = arith.truncf %27 : vector<1x8x8xf32> to vector<1x8x8xbf16>
    "tpu.trace_start"() <{level = 10 : i32, message = "bqk,bkd->bqd"}> : () -> ()
    %cst_10 = arith.constant dense<0.000000e+00> : vector<1x8x8xf32>
    %31 = tpu.matmul %30, %19, %cst_10 {dimension_numbers = #tpu.dot_dimension_numbers<[2], [1], [1], [2], [0, 0, 0, 1, 1, 2], [0], [0]>} : vector<1x8x8xbf16>, vector<1x8x8xbf16>, vector<1x8x8xf32> -> vector<1x8x8xf32>
    "tpu.trace_stop"() : () -> ()
    %32 = vector.broadcast %29 : vector<1x8x1xf32> to vector<1x8x8xf32>
    %33 = arith.divf %31, %32 : vector<1x8x8xf32>
    %34 = vector.shape_cast %33 : vector<1x8x8xf32> to vector<8x8xf32>
    %c0_11 = arith.constant 0 : index
    %c0_12 = arith.constant 0 : index
    %35 = vector.load %arg15[%c0_11, %c0_12] : memref<8x32xf32, #tpu.memory_space<vmem>>, vector<8x8xf32>
    tpu.vector_store %arg15[%c0_11, %c0_12], %34 {strides = array<i32>} : memref<8x32xf32, #tpu.memory_space<vmem>>, vector<8x8xf32>,
    %36 = vector.extract_strided_slice %11 {offsets = [0, 8], sizes = [8, 8], strides = [1, 1]} : vector<8x32xbf16> to vector<8x8xbf16>
    %37 = vector.shape_cast %36 : vector<8x8xbf16> to vector<1x8x8xbf16>
    %38 = vector.extract_strided_slice %12 {offsets = [0, 8], sizes = [8, 8], strides = [1, 1]} : vector<8x32xbf16> to vector<8x8xbf16>
    %39 = vector.shape_cast %38 : vector<8x8xbf16> to vector<1x8x8xbf16>
    %40 = vector.extract_strided_slice %13 {offsets = [0, 8], sizes = [8, 8], strides = [1, 1]} : vector<8x32xbf16> to vector<8x8xbf16>
    %41 = vector.shape_cast %40 : vector<8x8xbf16> to vector<1x8x8xbf16>
    "tpu.trace_start"() <{level = 10 : i32, message = "bqd,bkd->bqk"}> : () -> ()
    %cst_13 = arith.constant dense<0.000000e+00> : vector<1x8x8xf32>
    %42 = tpu.matmul %37, %39, %cst_13 {dimension_numbers = #tpu.dot_dimension_numbers<[2], [2], [1], [1], [0, 0, 0, 1, 1, 1], [0], [0]>} : vector<1x8x8xbf16>, vector<1x8x8xbf16>, vector<1x8x8xf32> -> vector<1x8x8xf32>
    "tpu.trace_stop"() : () -> ()
    %cst_14 = arith.constant 0.353553385 : f32
    %43 = vector.broadcast %cst_14 : f32 to vector<1x8x8xf32>
    %44 = arith.mulf %42, %43 : vector<1x8x8xf32>
    %cst_15 = arith.constant dense<0xFF800000> : vector<1x8xf32>
    %45 = vector.multi_reduction <maximumf>, %44, %cst_15 [2] : vector<1x8x8xf32> to vector<1x8xf32>
    %46 = vector.shape_cast %45 : vector<1x8xf32> to vector<1x8x1xf32>
    %47 = vector.broadcast %46 : vector<1x8x1xf32> to vector<1x8x8xf32>
    %48 = arith.subf %44, %47 : vector<1x8x8xf32>
    %49 = math.exp %48 : vector<1x8x8xf32>
    %cst_16 = arith.constant dense<0.000000e+00> : vector<1x8xf32>
    %50 = vector.multi_reduction <add>, %49, %cst_16 [2] : vector<1x8x8xf32> to vector<1x8xf32>
    %51 = vector.shape_cast %50 : vector<1x8xf32> to vector<1x8x1xf32>
    %52 = arith.truncf %49 : vector<1x8x8xf32> to vector<1x8x8xbf16>
    "tpu.trace_start"() <{level = 10 : i32, message = "bqk,bkd->bqd"}> : () -> ()
    %cst_17 = arith.constant dense<0.000000e+00> : vector<1x8x8xf32>
    %53 = tpu.matmul %52, %41, %cst_17 {dimension_numbers = #tpu.dot_dimension_numbers<[2], [1], [1], [2], [0, 0, 0, 1, 1, 2], [0], [0]>} : vector<1x8x8xbf16>, vector<1x8x8xbf16>, vector<1x8x8xf32> -> vector<1x8x8xf32>
    "tpu.trace_stop"() : () -> ()
    %54 = vector.broadcast %51 : vector<1x8x1xf32> to vector<1x8x8xf32>
    %55 = arith.divf %53, %54 : vector<1x8x8xf32>
    %56 = vector.shape_cast %55 : vector<1x8x8xf32> to vector<8x8xf32>
    %c0_18 = arith.constant 0 : index
    %c8 = arith.constant 8 : index
    %57 = vector.load %arg15[%c0_18, %c8] : memref<8x32xf32, #tpu.memory_space<vmem>>, vector<8x8xf32>
    tpu.vector_store %arg15[%c0_18, %c8], %56 {strides = array<i32>} : memref<8x32xf32, #tpu.memory_space<vmem>>, vector<8x8xf32>,
    %58 = vector.extract_strided_slice %11 {offsets = [0, 16], sizes = [8, 8], strides = [1, 1]} : vector<8x32xbf16> to vector<8x8xbf16>
    %59 = vector.shape_cast %58 : vector<8x8xbf16> to vector<1x8x8xbf16>
    %60 = vector.extract_strided_slice %12 {offsets = [0, 16], sizes = [8, 8], strides = [1, 1]} : vector<8x32xbf16> to vector<8x8xbf16>
    %61 = vector.shape_cast %60 : vector<8x8xbf16> to vector<1x8x8xbf16>
    %62 = vector.extract_strided_slice %13 {offsets = [0, 16], sizes = [8, 8], strides = [1, 1]} : vector<8x32xbf16> to vector<8x8xbf16>
    %63 = vector.shape_cast %62 : vector<8x8xbf16> to vector<1x8x8xbf16>
    "tpu.trace_start"() <{level = 10 : i32, message = "bqd,bkd->bqk"}> : () -> ()
    %cst_19 = arith.constant dense<0.000000e+00> : vector<1x8x8xf32>
    %64 = tpu.matmul %59, %61, %cst_19 {dimension_numbers = #tpu.dot_dimension_numbers<[2], [2], [1], [1], [0, 0, 0, 1, 1, 1], [0], [0]>} : vector<1x8x8xbf16>, vector<1x8x8xbf16>, vector<1x8x8xf32> -> vector<1x8x8xf32>
    "tpu.trace_stop"() : () -> ()
    %cst_20 = arith.constant 0.353553385 : f32
    %65 = vector.broadcast %cst_20 : f32 to vector<1x8x8xf32>
    %66 = arith.mulf %64, %65 : vector<1x8x8xf32>
    %cst_21 = arith.constant dense<0xFF800000> : vector<1x8xf32>
    %67 = vector.multi_reduction <maximumf>, %66, %cst_21 [2] : vector<1x8x8xf32> to vector<1x8xf32>
    %68 = vector.shape_cast %67 : vector<1x8xf32> to vector<1x8x1xf32>
    %69 = vector.broadcast %68 : vector<1x8x1xf32> to vector<1x8x8xf32>
    %70 = arith.subf %66, %69 : vector<1x8x8xf32>
    %71 = math.exp %70 : vector<1x8x8xf32>
    %cst_22 = arith.constant dense<0.000000e+00> : vector<1x8xf32>
    %72 = vector.multi_reduction <add>, %71, %cst_22 [2] : vector<1x8x8xf32> to vector<1x8xf32>
    %73 = vector.shape_cast %72 : vector<1x8xf32> to vector<1x8x1xf32>
    %74 = arith.truncf %71 : vector<1x8x8xf32> to vector<1x8x8xbf16>
    "tpu.trace_start"() <{level = 10 : i32, message = "bqk,bkd->bqd"}> : () -> ()
    %cst_23 = arith.constant dense<0.000000e+00> : vector<1x8x8xf32>
    %75 = tpu.matmul %74, %63, %cst_23 {dimension_numbers = #tpu.dot_dimension_numbers<[2], [1], [1], [2], [0, 0, 0, 1, 1, 2], [0], [0]>} : vector<1x8x8xbf16>, vector<1x8x8xbf16>, vector<1x8x8xf32> -> vector<1x8x8xf32>
    "tpu.trace_stop"() : () -> ()
    %76 = vector.broadcast %73 : vector<1x8x1xf32> to vector<1x8x8xf32>
    %77 = arith.divf %75, %76 : vector<1x8x8xf32>
    %78 = vector.shape_cast %77 : vector<1x8x8xf32> to vector<8x8xf32>
    %c0_24 = arith.constant 0 : index
    %c16 = arith.constant 16 : index
    %79 = vector.load %arg15[%c0_24, %c16] : memref<8x32xf32, #tpu.memory_space<vmem>>, vector<8x8xf32>
    tpu.vector_store %arg15[%c0_24, %c16], %78 {strides = array<i32>} : memref<8x32xf32, #tpu.memory_space<vmem>>, vector<8x8xf32>,
    %80 = vector.extract_strided_slice %11 {offsets = [0, 24], sizes = [8, 8], strides = [1, 1]} : vector<8x32xbf16> to vector<8x8xbf16>
    %81 = vector.shape_cast %80 : vector<8x8xbf16> to vector<1x8x8xbf16>
    %82 = vector.extract_strided_slice %12 {offsets = [0, 24], sizes = [8, 8], strides = [1, 1]} : vector<8x32xbf16> to vector<8x8xbf16>
    %83 = vector.shape_cast %82 : vector<8x8xbf16> to vector<1x8x8xbf16>
    %84 = vector.extract_strided_slice %13 {offsets = [0, 24], sizes = [8, 8], strides = [1, 1]} : vector<8x32xbf16> to vector<8x8xbf16>
    %85 = vector.shape_cast %84 : vector<8x8xbf16> to vector<1x8x8xbf16>
    "tpu.trace_start"() <{level = 10 : i32, message = "bqd,bkd->bqk"}> : () -> ()
    %cst_25 = arith.constant dense<0.000000e+00> : vector<1x8x8xf32>
    %86 = tpu.matmul %81, %83, %cst_25 {dimension_numbers = #tpu.dot_dimension_numbers<[2], [2], [1], [1], [0, 0, 0, 1, 1, 1], [0], [0]>} : vector<1x8x8xbf16>, vector<1x8x8xbf16>, vector<1x8x8xf32> -> vector<1x8x8xf32>
    "tpu.trace_stop"() : () -> ()
    %cst_26 = arith.constant 0.353553385 : f32
    %87 = vector.broadcast %cst_26 : f32 to vector<1x8x8xf32>
    %88 = arith.mulf %86, %87 : vector<1x8x8xf32>
    %cst_27 = arith.constant dense<0xFF800000> : vector<1x8xf32>
    %89 = vector.multi_reduction <maximumf>, %88, %cst_27 [2] : vector<1x8x8xf32> to vector<1x8xf32>
    %90 = vector.shape_cast %89 : vector<1x8xf32> to vector<1x8x1xf32>
    %91 = vector.broadcast %90 : vector<1x8x1xf32> to vector<1x8x8xf32>
    %92 = arith.subf %88, %91 : vector<1x8x8xf32>
    %93 = math.exp %92 : vector<1x8x8xf32>
    %cst_28 = arith.constant dense<0.000000e+00> : vector<1x8xf32>
    %94 = vector.multi_reduction <add>, %93, %cst_28 [2] : vector<1x8x8xf32> to vector<1x8xf32>
    %95 = vector.shape_cast %94 : vector<1x8xf32> to vector<1x8x1xf32>
    %96 = arith.truncf %93 : vector<1x8x8xf32> to vector<1x8x8xbf16>
    "tpu.trace_start"() <{level = 10 : i32, message = "bqk,bkd->bqd"}> : () -> ()
    %cst_29 = arith.constant dense<0.000000e+00> : vector<1x8x8xf32>
    %97 = tpu.matmul %96, %85, %cst_29 {dimension_numbers = #tpu.dot_dimension_numbers<[2], [1], [1], [2], [0, 0, 0, 1, 1, 2], [0], [0]>} : vector<1x8x8xbf16>, vector<1x8x8xbf16>, vector<1x8x8xf32> -> vector<1x8x8xf32>
    "tpu.trace_stop"() : () -> ()
    %98 = vector.broadcast %95 : vector<1x8x1xf32> to vector<1x8x8xf32>
    %99 = arith.divf %97, %98 : vector<1x8x8xf32>
    %100 = vector.shape_cast %99 : vector<1x8x8xf32> to vector<8x8xf32>
    %c0_30 = arith.constant 0 : index
    %c24 = arith.constant 24 : index
    %101 = vector.load %arg15[%c0_30, %c24] : memref<8x32xf32, #tpu.memory_space<vmem>>, vector<8x8xf32>
    tpu.vector_store %arg15[%c0_30, %c24], %100 {strides = array<i32>} : memref<8x32xf32, #tpu.memory_space<vmem>>, vector<8x8xf32>,
    %c0_31 = arith.constant 0 : index
    %c0_32 = arith.constant 0 : index
    %102 = vector.load %arg15[%c0_31, %c0_32] : memref<8x32xf32, #tpu.memory_space<vmem>>, vector<8x32xf32>
    %103 = arith.truncf %102 : vector<8x32xf32> to vector<8x32xbf16>
    %c0_33 = arith.constant 0 : index
    %c0_34 = arith.constant 0 : index
    %104 = vector.load %arg4[%c0_33, %c0_34] : memref<32x32xbf16, #tpu.memory_space<vmem>>, vector<32x32xbf16>
    %cst_35 = arith.constant dense<0.000000e+00> : vector<8x32xf32>
    %105 = tpu.matmul %103, %104, %cst_35 {dimension_numbers = #tpu.dot_dimension_numbers<[1], [0], [0], [1], [0, 0, 1, 1], [], []>} : vector<8x32xbf16>, vector<32x32xbf16>, vector<8x32xf32> -> vector<8x32xf32>
    %c0_36 = arith.constant 0 : index
    %c0_37 = arith.constant 0 : index
    %106 = vector.load %arg5[%c0_36, %c0_37] : memref<1x32xf32, #tpu.memory_space<vmem>>, vector<1x32xf32>
    %107 = vector.shape_cast %106 : vector<1x32xf32> to vector<32xf32>
    %108 = vector.shape_cast %107 : vector<32xf32> to vector<1x32xf32>
    %109 = vector.broadcast %108 : vector<1x32xf32> to vector<8x32xf32>
    %110 = arith.addf %105, %109 : vector<8x32xf32>
    %111 = arith.addf %1, %110 : vector<8x32xf32>
    %cst_38 = arith.constant dense<0.000000e+00> : vector<8xf32>
    %112 = vector.multi_reduction <add>, %111, %cst_38 [1] : vector<8x32xf32> to vector<8xf32>
    %113 = vector.shape_cast %112 : vector<8xf32> to vector<8x1xf32>
    %cst_39 = arith.constant 3.200000e+01 : f32
    %114 = vector.broadcast %cst_39 : f32 to vector<8x1xf32>
    %115 = arith.divf %113, %114 : vector<8x1xf32>
    %116 = vector.broadcast %115 : vector<8x1xf32> to vector<8x32xf32>
    %117 = arith.subf %111, %116 : vector<8x32xf32>
    %118 = arith.mulf %117, %117 : vector<8x32xf32>
    %cst_40 = arith.constant dense<0.000000e+00> : vector<8xf32>
    %119 = vector.multi_reduction <add>, %118, %cst_40 [1] : vector<8x32xf32> to vector<8xf32>
    %120 = vector.shape_cast %119 : vector<8xf32> to vector<8x1xf32>
    %cst_41 = arith.constant 3.200000e+01 : f32
    %121 = vector.broadcast %cst_41 : f32 to vector<8x1xf32>
    %122 = arith.divf %120, %121 : vector<8x1xf32>
    %123 = vector.broadcast %115 : vector<8x1xf32> to vector<8x32xf32>
    %124 = arith.subf %111, %123 : vector<8x32xf32>
    %cst_42 = arith.constant 9.99999974E-6 : f32
    %125 = vector.broadcast %cst_42 : f32 to vector<8x1xf32>
    %126 = arith.addf %122, %125 : vector<8x1xf32>
    %127 = math.rsqrt %126 : vector<8x1xf32>
    %128 = vector.broadcast %127 : vector<8x1xf32> to vector<8x32xf32>
    %129 = arith.mulf %124, %128 : vector<8x32xf32>
    %c0_43 = arith.constant 0 : index
    %c0_44 = arith.constant 0 : index
    %130 = vector.load %arg10[%c0_43, %c0_44] : memref<1x32xf32, #tpu.memory_space<vmem>>, vector<1x32xf32>
    %131 = vector.shape_cast %130 : vector<1x32xf32> to vector<32xf32>
    %132 = vector.shape_cast %131 : vector<32xf32> to vector<1x32xf32>
    %133 = vector.broadcast %132 : vector<1x32xf32> to vector<8x32xf32>
    %134 = arith.mulf %129, %133 : vector<8x32xf32>
    %c0_45 = arith.constant 0 : index
    %c0_46 = arith.constant 0 : index
    %135 = vector.load %arg11[%c0_45, %c0_46] : memref<1x32xf32, #tpu.memory_space<vmem>>, vector<1x32xf32>
    %136 = vector.shape_cast %135 : vector<1x32xf32> to vector<32xf32>
    %137 = vector.shape_cast %136 : vector<32xf32> to vector<1x32xf32>
    %138 = vector.broadcast %137 : vector<1x32xf32> to vector<8x32xf32>
    %139 = arith.addf %134, %138 : vector<8x32xf32>
    %140 = arith.truncf %139 : vector<8x32xf32> to vector<8x32xbf16>
    %c0_47 = arith.constant 0 : index
    %c0_48 = arith.constant 0 : index
    %141 = vector.load %arg6[%c0_47, %c0_48] : memref<32x64xbf16, #tpu.memory_space<vmem>>, vector<32x64xbf16>
    %cst_49 = arith.constant dense<0.000000e+00> : vector<8x64xf32>
    %142 = tpu.matmul %140, %141, %cst_49 {dimension_numbers = #tpu.dot_dimension_numbers<[1], [0], [0], [1], [0, 0, 1, 1], [], []>} : vector<8x32xbf16>, vector<32x64xbf16>, vector<8x64xf32> -> vector<8x64xf32>
    %c0_50 = arith.constant 0 : index
    %c0_51 = arith.constant 0 : index
    %143 = vector.load %arg7[%c0_50, %c0_51] : memref<1x64xf32, #tpu.memory_space<vmem>>, vector<1x64xf32>
    %144 = vector.shape_cast %143 : vector<1x64xf32> to vector<64xf32>
    %145 = vector.shape_cast %144 : vector<64xf32> to vector<1x64xf32>
    %146 = vector.broadcast %145 : vector<1x64xf32> to vector<8x64xf32>
    %147 = arith.addf %142, %146 : vector<8x64xf32>
    %cst_52 = arith.constant 0.000000e+00 : f32
    %148 = vector.broadcast %cst_52 : f32 to vector<8x64xf32>
    %149 = arith.maximumf %147, %148 : vector<8x64xf32>
    %150 = arith.truncf %149 : vector<8x64xf32> to vector<8x64xbf16>
    %c0_53 = arith.constant 0 : index
    %c0_54 = arith.constant 0 : index
    %151 = vector.load %arg8[%c0_53, %c0_54] : memref<64x32xbf16, #tpu.memory_space<vmem>>, vector<64x32xbf16>
    %cst_55 = arith.constant dense<0.000000e+00> : vector<8x32xf32>
    %152 = tpu.matmul %150, %151, %cst_55 {dimension_numbers = #tpu.dot_dimension_numbers<[1], [0], [0], [1], [0, 0, 1, 1], [], []>} : vector<8x64xbf16>, vector<64x32xbf16>, vector<8x32xf32> -> vector<8x32xf32>
    %c0_56 = arith.constant 0 : index
    %c0_57 = arith.constant 0 : index
    %153 = vector.load %arg9[%c0_56, %c0_57] : memref<1x32xf32, #tpu.memory_space<vmem>>, vector<1x32xf32>
    %154 = vector.shape_cast %153 : vector<1x32xf32> to vector<32xf32>
    %155 = vector.shape_cast %154 : vector<32xf32> to vector<1x32xf32>
    %156 = vector.broadcast %155 : vector<1x32xf32> to vector<8x32xf32>
    %157 = arith.addf %152, %156 : vector<8x32xf32>
    %158 = arith.addf %139, %157 : vector<8x32xf32>
    %cst_58 = arith.constant dense<0.000000e+00> : vector<8xf32>
    %159 = vector.multi_reduction <add>, %158, %cst_58 [1] : vector<8x32xf32> to vector<8xf32>
    %160 = vector.shape_cast %159 : vector<8xf32> to vector<8x1xf32>
    %cst_59 = arith.constant 3.200000e+01 : f32
    %161 = vector.broadcast %cst_59 : f32 to vector<8x1xf32>
    %162 = arith.divf %160, %161 : vector<8x1xf32>
    %163 = vector.broadcast %162 : vector<8x1xf32> to vector<8x32xf32>
    %164 = arith.subf %158, %163 : vector<8x32xf32>
    %165 = arith.mulf %164, %164 : vector<8x32xf32>
    %cst_60 = arith.constant dense<0.000000e+00> : vector<8xf32>
    %166 = vector.multi_reduction <add>, %165, %cst_60 [1] : vector<8x32xf32> to vector<8xf32>
    %167 = vector.shape_cast %166 : vector<8xf32> to vector<8x1xf32>
    %cst_61 = arith.constant 3.200000e+01 : f32
    %168 = vector.broadcast %cst_61 : f32 to vector<8x1xf32>
    %169 = arith.divf %167, %168 : vector<8x1xf32>
    %170 = vector.broadcast %162 : vector<8x1xf32> to vector<8x32xf32>
    %171 = arith.subf %158, %170 : vector<8x32xf32>
    %cst_62 = arith.constant 9.99999974E-6 : f32
    %172 = vector.broadcast %cst_62 : f32 to vector<8x1xf32>
    %173 = arith.addf %169, %172 : vector<8x1xf32>
    %174 = math.rsqrt %173 : vector<8x1xf32>
    %175 = vector.broadcast %174 : vector<8x1xf32> to vector<8x32xf32>
    %176 = arith.mulf %171, %175 : vector<8x32xf32>
    %c0_63 = arith.constant 0 : index
    %c0_64 = arith.constant 0 : index
    %177 = vector.load %arg12[%c0_63, %c0_64] : memref<1x32xf32, #tpu.memory_space<vmem>>, vector<1x32xf32>
    %178 = vector.shape_cast %177 : vector<1x32xf32> to vector<32xf32>
    %179 = vector.shape_cast %178 : vector<32xf32> to vector<1x32xf32>
    %180 = vector.broadcast %179 : vector<1x32xf32> to vector<8x32xf32>
    %181 = arith.mulf %176, %180 : vector<8x32xf32>
    %c0_65 = arith.constant 0 : index
    %c0_66 = arith.constant 0 : index
    %182 = vector.load %arg13[%c0_65, %c0_66] : memref<1x32xf32, #tpu.memory_space<vmem>>, vector<1x32xf32>
    %183 = vector.shape_cast %182 : vector<1x32xf32> to vector<32xf32>
    %184 = vector.shape_cast %183 : vector<32xf32> to vector<1x32xf32>
    %185 = vector.broadcast %184 : vector<1x32xf32> to vector<8x32xf32>
    %186 = arith.addf %181, %185 : vector<8x32xf32>
    %187 = vector.shape_cast %186 : vector<8x32xf32> to vector<1x8x32xf32>
    %c0_67 = arith.constant 0 : index
    %c0_68 = arith.constant 0 : index
    %c0_69 = arith.constant 0 : index
    %188 = vector.load %arg14[%c0_67, %c0_68, %c0_69] : memref<1x8x32xf32, #tpu.memory_space<vmem>>, vector<1x8x32xf32>
    tpu.vector_store %arg14[%c0_67, %c0_68, %c0_69], %187 {strides = array<i32>} : memref<1x8x32xf32, #tpu.memory_space<vmem>>, vector<1x8x32xf32>,
    return
  }
  func.func @transform_0(%arg0: i32) -> (i32, i32, i32) {
    %c0_i32 = arith.constant 0 : i32
    %c0_i32_0 = arith.constant 0 : i32
    %c0_i32_1 = arith.constant 0 : i32
    return %arg0, %c0_i32, %c0_i32_0 : i32, i32, i32
  }
  func.func @transform_1(%arg0: i32) -> (i32, i32) {
    %c0_i32 = arith.constant 0 : i32
    %c0_i32_0 = arith.constant 0 : i32
    %c0_i32_1 = arith.constant 0 : i32
    return %c0_i32, %c0_i32_0 : i32, i32
  }
  func.func @transform_2(%arg0: i32) -> (i32, i32) {
    %c0_i32 = arith.constant 0 : i32
    %c0_i32_0 = arith.constant 0 : i32
    %c0_i32_1 = arith.constant 0 : i32
    return %c0_i32, %c0_i32_0 : i32, i32
  }
  func.func @transform_3(%arg0: i32) -> (i32, i32) {
    %c0_i32 = arith.constant 0 : i32
    %c0_i32_0 = arith.constant 0 : i32
    %c0_i32_1 = arith.constant 0 : i32
    return %c0_i32, %c0_i32_0 : i32, i32
  }
  func.func @transform_4(%arg0: i32) -> (i32, i32) {
    %c0_i32 = arith.constant 0 : i32
    %c0_i32_0 = arith.constant 0 : i32
    %c0_i32_1 = arith.constant 0 : i32
    return %c0_i32, %c0_i32_0 : i32, i32
  }
  func.func @transform_5(%arg0: i32) -> (i32, i32) {
    %c0_i32 = arith.constant 0 : i32
    %c0_i32_0 = arith.constant 0 : i32
    %c0_i32_1 = arith.constant 0 : i32
    return %c0_i32, %c0_i32_0 : i32, i32
  }
  func.func @transform_6(%arg0: i32) -> (i32, i32) {
    %c0_i32 = arith.constant 0 : i32
    %c0_i32_0 = arith.constant 0 : i32
    %c0_i32_1 = arith.constant 0 : i32
    return %c0_i32, %c0_i32_0 : i32, i32
  }
  func.func @transform_7(%arg0: i32) -> (i32, i32) {
    %c0_i32 = arith.constant 0 : i32
    %c0_i32_0 = arith.constant 0 : i32
    %c0_i32_1 = arith.constant 0 : i32
    return %c0_i32, %c0_i32_0 : i32, i32
  }
  func.func @transform_8(%arg0: i32) -> (i32, i32) {
    %c0_i32 = arith.constant 0 : i32
    %c0_i32_0 = arith.constant 0 : i32
    %c0_i32_1 = arith.constant 0 : i32
    return %c0_i32, %c0_i32_0 : i32, i32
  }
  func.func @transform_9(%arg0: i32) -> (i32, i32) {
    %c0_i32 = arith.constant 0 : i32
    %c0_i32_0 = arith.constant 0 : i32
    %c0_i32_1 = arith.constant 0 : i32
    return %c0_i32, %c0_i32_0 : i32, i32
  }
  func.func @transform_10(%arg0: i32) -> (i32, i32) {
    %c0_i32 = arith.constant 0 : i32
    %c0_i32_0 = arith.constant 0 : i32
    %c0_i32_1 = arith.constant 0 : i32
    return %c0_i32, %c0_i32_0 : i32, i32
  }
  func.func @transform_11(%arg0: i32) -> (i32, i32) {
    %c0_i32 = arith.constant 0 : i32
    %c0_i32_0 = arith.constant 0 : i32
    %c0_i32_1 = arith.constant 0 : i32
    return %c0_i32, %c0_i32_0 : i32, i32
  }
  func.func @transform_12(%arg0: i32) -> (i32, i32) {
    %c0_i32 = arith.constant 0 : i32
    %c0_i32_0 = arith.constant 0 : i32
    %c0_i32_1 = arith.constant 0 : i32
    return %c0_i32, %c0_i32_0 : i32, i32
  }
  func.func @transform_13(%arg0: i32) -> (i32, i32, i32) {
    %c0_i32 = arith.constant 0 : i32
    %c0_i32_0 = arith.constant 0 : i32
    %c0_i32_1 = arith.constant 0 : i32
    return %arg0, %c0_i32, %c0_i32_0 : i32, i32, i32
  }
}

</mosaic_0001>

<bundles_post_ra>
// kernel: tpu_custom_call.1
= control target key start
LH: loop header
LB: loop body
LE: loop exit
PB: predicated region body
PF: predicated region fallthrough
CT: control target
= control target key end

     0   :  { %s2036_s0 = inlined_call_operand.vmem [shape: f32[2,8,32], index: 0, kind: input, shape index: {}]   ;;  %s2037_s1 = inlined_call_operand.vmem [shape: bf16[32,96], index: 1, kind: input, shape index: {}]   ;;  %s2038_s2 = inlined_call_operand.vmem [shape: f32[1,96], index: 2, kind: input, shape index: {}]   ;;  %s2039_s3 = inlined_call_operand.vmem [shape: bf16[32,32], index: 3, kind: input, shape index: {}]   ;;  %s2040_s4 = inlined_call_operand.vmem [shape: f32[1,32], index: 4, kind: input, shape index: {}]   ;;  %s2041_s5 = inlined_call_operand.hbm [shape: bf16[32,64], index: 5, kind: input, shape index: {}]   ;;  %s2042_s6 = inlined_call_operand.vmem [shape: f32[1,64], index: 6, kind: input, shape index: {}]   ;;  %s2043_s7 = inlined_call_operand.vmem [shape: bf16[64,32], index: 7, kind: input, shape index: {}]   ;;  %s2044_s8 = inlined_call_operand.vmem [shape: f32[1,32], index: 8, kind: input, shape index: {}]   ;;  %s2045_s9 = inlined_call_operand.vmem [shape: f32[1,32], index: 9, kind: input, shape index: {}]   ;;  %s2046_s10 = inlined_call_operand.vmem [shape: f32[1,32], index: 10, kind: input, shape index: {}]   ;;  %s2047_s11 = inlined_call_operand.vmem [shape: f32[1,32], index: 11, kind: input, shape index: {}]   ;;  %s2048_s12 = inlined_call_operand.vmem [shape: f32[1,32], index: 12, kind: input, shape index: {}]   ;;  %s2049_s13 = inlined_call_operand.hbm [shape: f32[2,8,32], index: 13, kind: output, shape index: {}]  }
   0x1   :  { %2050 = sst [smem:[#allocation9_spill]] %s2036_s0 }
   0x2   :  { %2051 = sst [smem:[#allocation10_spill]] %s2037_s1 }
   0x3   :  { %2052 = sst [smem:[#allocation11_spill]] %s2038_s2 }
   0x4   :  { %2053 = sst [smem:[#allocation12_spill]] %s2039_s3 }
   0x5   :  { %2054 = sst [smem:[#allocation13_spill]] %s2041_s5 }
   0x6   :  { %18 = vsyncpa [#allocation4], 0 }
   0x7   :  { %19 = vsyncpa [#allocation5], 0 }
   0x8   :  { %21 = vsyncpa [#allocation5 + $0x1], 0  ;;  %s1789_s25 = smov 0   ;;  %s1791_s26 = smov 0  }
   0x9   :  { %s1793_s27 = smov 0   ;;  %s1795_s28 = smov 0  }
   0xa LB: > { %s1810_s29 = sadd.s32 4294967295, %s1697_s28   ;;  %s1353_s30 = sadd.s32 4294967294, %s1697_s28   ;;  %s1697_s28 = sphi %s1795_s28, %s2067_s28   ;;  %s1693_s27 = sphi %s1793_s27, %s2066_s27   ;;  %s1689_s26 = sphi %s1791_s26, %s2065_s26   ;;  %s1685_s25 = sphi %s1789_s25, %s2064_s25  }
   0xb   : > { %s1814_s14 = sadd.s32 1, %s1697_s28   ;;  %s312_s15 = sadd.s32 1, %s1693_s27 }
   0xc   : > { %s309_s16 = ssub.s32 %s1697_s28, %s1814_s14  ;;  %p322_p0 = scmp.ne.s32.totalorder %s1693_s27, %s1689_s26 }
   0xd   : > { %p310_p1 = scmp.eq.s32.totalorder %s309_s16, 0  ;;  %p323_p2 = scmp.eq.s32.totalorder %s1810_s29, 1 }
   0xe   : > { %p328_p3 = scmp.ne.s32.totalorder %s1689_s26, %s1685_s25  ;;  %p329_p4 = scmp.eq.s32.totalorder %s1353_s30, 1 }
   0xf   : > { %s1825_s17 = scalar_select %p310_p1, %s1693_s27, %s312_s15  }
  0x10   : > { %p1827_p5 = por %p323_p2, %p322_p0  ;;  %p1831_p6 = por %p329_p4, %p328_p3 }
  0x11   : > { %p1354_p7 = scmp.ge.s32.totalorder %s1697_s28, 1  ;;  %p336_p8 = scmp.lt.s32.totalorder %s1697_s28, 3 }
  0x12   : > { %s2056_s19 = scalar_select %p1831_p6, 1, 0 }
  0x13   : > { %p1523_p9 = scmp.eq.s32.totalorder %s1810_s29, 0  ;;  %p1838_p10 = pnand %p1354_p7, %p336_p8 }
  0x14   : > { %s1699_s21 = smov [#allocation3]  }
  0x15   : > { %s360_s22 = sshll.u32 %s1699_s21, 4  ;;  %p1515_p11 = pneg %p1838_p10  ;;  %s361_s22 = int_to_ptr.vmem [resolvable:$true] %s360_s22 }
  0x16   : > { %s1618_s23 = scalar_lea.vmem %s361_s22, 256  ;;  %p1626_p3 = scmp.lt.s32.totalorder %s361_s22, %s361_s22 }
  0x17   : > { %p1516_p12 = pnand %p1523_p9, %p1515_p11  ;;  %p1619_p0 = scmp.ne.s32.totalorder %s361_s22, %s1618_s23 }
  0x18   : > { %p1627_p4 = scmp.lt.s32.totalorder %s1618_s23, %s1618_s23 }
  0x19   : > { %p1609_p13 = pneg %p1516_p12 }
  0x1a   : > { %p1628_p6 = por %p1627_p4, %p1626_p3 }
  0x1b   : > { %p1621_p1 = pnand %p1619_p0, %p1609_p13 }
  0x1d   : > { %p1622_p2 = pneg %p1621_p1 }
  0x1f   : > { %p1629_p7 = pnand %p1628_p6, %p1622_p2 }
  0x21   : > { %1632 = shalt.err (!%p1629_p7)
}
  0x22   : > { %s1700_s24 = smov 64   ;;  %s1701_s30 = smov 4  }
  0x23   : > { %s2058_s5 = sld [smem:[#allocation13_spill]] }
  0x25   : > { %404 = sbr.rel (%p1838_p10) target bundleno = 2329 (0x919), region = 72 }
  0x29   : > { %1518 = dma.hbm_to_vmem [thread:$0]  (!%p1516_p12), %s2058_s5, 256, %s361_s22, [#allocation4], %s1700_s24, %s1700_s24, %s1701_s30  }
  0x2a   : > { %1676 = dma.done.wait (%p1523_p9), [#allocation4], 256  }
  0x2b   : > { %1678 = vsyncadd (%p1523_p9), [#allocation4], 4294967040  ;;  %p447_p8 = scmp.lt.s32.totalorder %s1810_s29, 1  ;;  %v1702_v0 = vmov 0.0   ;;  %vm1703_vm0 = vmmov 0   ;;  %s2059_s0 = sld [smem:[#allocation9_spill]] }
  0x2c   : > { %1425 = vmatprep.subr.bf16.mxu0 %v1702_v0  ;;  %1429 = vmatprep.mubr.msk.bf16.mxu0 %vm1703_vm0, %v1702_v0  ;;  %s2060_s1 = sld [smem:[#allocation10_spill]]  ;;  %vm477_vm1 = vcmask 261120   ;;  %s1704_s5 = smov 120   ;;  %vm525_vm2 = vcmask 64512   ;;  %vm588_vm3 = vcmask 1043456   ;;  %vm750_vm4 = vcmask 130112  }
  0x2d   : > { %s448_s21 = scalar_select %p447_p8, %s1810_s29, 1  ;;  %1433 = vmatprep.subr.bf16.mxu1 %v1702_v0  ;;  %1435 = vmatprep.mubr.msk.bf16.mxu1 %vm1703_vm0, %v1702_v0  ;;  %vm867_vm5 = vcmask 195712   ;;  %vm984_vm6 = vcmask 261312   ;;  %vm1193_vm7 = vcmask 523264  }
  0x2e   : > { %s2061_s2 = sld [smem:[#allocation11_spill]]  ;;  %s1705_s22 = smov 96  }
  0x2f   : > { %s1360_s20 = sshll.u32 %s448_s21, 3  ;;  %s1706_s23 = smov 80  }
  0x30   : > { %s1708_s30 = smov 72   ;;  %s1709_s15 = smov 112  }
  0x31   : > { %s450_s24 = scalar_lea.vmem %s2059_s0, %s1360_s20  ;;  %s1710_s16 = smov 104  }
  0x32   : > { %v1577_v1 = vld [vmem:[%s2060_s1 + $0x8] sm:$0xff]   ;;  %v1578_v2 = vld [vmem:[%s2060_s1] sm:$0xff]   ;;  %s1711_s21 = smov 56   ;;  %s1712_s20 = smov 64  }
  0x33   : > { %1426 = vmatpush3.bf16.msra.mxu0 %v1577_v1  ;;  %v1872_v3 = vld [vmem:[%s450_s24] sm:$0xff]  ;;  %s1707_s24 = smov 88   ;;  %s2062_s3 = sld [smem:[#allocation12_spill]] }
  0x34   : > { %1427 = vmatprep.subr.bf16.mxu0 %v1702_v0  ;;  %v453_v4 = vpack.c.bf16 %v1872_v3, %v1872_v3  ;;  %v1361_v5 = vld [vmem:[%s2061_s2] ss:$0 sm:$0xff] }
  0x37   : > { %1428 = vmatpush3.bf16.msra.mxu0 %v1578_v2 }
  0x38   : > { %1439 = vmatprep.subr.bf16.mxu0 %v1702_v0 }
  0x3a   : > { %1430 = vmatmul.mubr.msk.bf16.vlgmr.msra.gmra.mxu0 %vm477_vm1, %v453_v4 }
  0x3b   : > { %1441 = vmatprep.mubr.msk.bf16.mxu0 %vm1703_vm0, %v1702_v0 }
  0xfa   : > { %v515_v6 = vpop.f32.mrf.mxu0 }
  0xfb   : > { %v516_v7 = vadd.f32 %v1361_v5, %v515_v6 }
  0xfc   : > { %v1431_v8 = vpop.f32.mrf.mxu0 }
  0xfd   : > { %v1884_v9 = vpack.c.bf16 %v516_v7, %v516_v7 }
  0xfe   : > { %v518_v10 = vpop.f32.mrf.mxu0 }
  0xff   : > { %635 = vrot.lane.b32.xlu1 %v1884_v9, %s1704_s5  ;;  %523 = vrot.lane.b32.xlu0 %v1884_v9, %s1705_s22  ;;  %s1713_s5 = smov 40   ;;  %s1714_s22 = smov 48  }
 0x100   : > { %v1432_v11 = vpop.f32.mrf.mxu0 }
 0x103   : > { %754 = vrot.lane.b32.xlu1 %v1884_v9, %s1706_s23  ;;  %637 = vrot.lane.b32.xlu0 %v1884_v9, %s1707_s24  ;;  %s1715_s23 = smov 8   ;;  %s1718_s24 = smov [#allocation6]  }
 0x107   : > { %871 = vrot.lane.b32.xlu1 %v1884_v9, %s1708_s30  ;;  %752 = vrot.lane.b32.xlu0 %v1884_v9, %s1709_s15  ;;  %s1716_s15 = smov 16   ;;  %s1637_s30 = sshll.u32 %s1718_s24, 4  ;;  %s1638_s30 = int_to_ptr.vmem [resolvable:$false] %s1637_s30 }
 0x10b   : > { %869 = vrot.lane.b32.xlu0 %v1884_v9, %s1710_s16  ;;  %s1392_s16 = sshll.u32 %s1810_s29, 7  ;;  %s1639_s29 = scalar_lea.vmem %s1638_s30, 256 }
 0x10c   : > { %s1280_s2 = scalar_lea.hbm %s2049_s13, %s1392_s16 }
 0x171   : > { %v524_v12 = vpop.permute.xlu0 %523  ;;  %v636_v15 = vpop.permute.xlu1 %635 }
 0x172   : > { %v530_v13 = vsel %vm525_vm2, %v524_v12, 0 }
 0x173   : > { %1434 = vmatpush3.bf16.xpose.msra.mxu1 %v530_v13 }
 0x174   : > { %1445 = vmatprep.subr.bf16.mxu1 %v1702_v0 }
 0x175   : > { %v638_v14 = vpop.permute.xlu0 %637  ;;  %v755_v17 = vpop.permute.xlu1 %754 }
 0x176   : > { %v643_v16 = vsel %vm525_vm2, %v638_v14, 0  ;;  %v760_v18 = vsel %vm525_vm2, %v755_v17, 0 }
 0x179   : > { %v872_v19 = vpop.permute.xlu1 %871  ;;  %v753_v20 = vpop.permute.xlu0 %752 }
 0x17a   : > { %1436 = vmatmul.mubr.msk.bf16.vlgmr.msra.gmra.mxu1 %vm525_vm2, %v1884_v9  ;;  %v877_v21 = vsel %vm525_vm2, %v872_v19, 0 }
 0x17b   : > { %1446 = vmatpush3.bf16.xpose.msra.mxu1 %v643_v16  ;;  %1447 = vmatprep.mubr.msk.bf16.mxu1 %vm1703_vm0, %v1702_v0 }
 0x17c   : > { %1457 = vmatprep.subr.bf16.mxu1 %v1702_v0 }
 0x17d   : > { %v870_v22 = vpop.permute.xlu0 %869 }
 0x182   : > { %1448 = vmatmul.mubr.msk.bf16.vlgmr.msra.gmra.mxu1 %vm525_vm2, %v636_v15 }
 0x183   : > { %1458 = vmatpush3.bf16.xpose.msra.mxu1 %v760_v18  ;;  %1459 = vmatprep.mubr.msk.bf16.mxu1 %vm1703_vm0, %v1702_v0 }
 0x184   : > { %1469 = vmatprep.subr.bf16.mxu1 %v1702_v0 }
 0x18a   : > { %1460 = vmatmul.mubr.msk.bf16.vlgmr.msra.gmra.mxu1 %vm525_vm2, %v753_v20 }
 0x18b   : > { %1470 = vmatpush3.bf16.xpose.msra.mxu1 %v877_v21  ;;  %1471 = vmatprep.mubr.msk.bf16.mxu1 %vm1703_vm0, %v1702_v0 }
 0x18c   : > { %1481 = vmatprep.subr.bf16.mxu1 %v1702_v0 }
 0x192   : > { %1472 = vmatmul.mubr.msk.bf16.vlgmr.msra.gmra.mxu1 %vm525_vm2, %v870_v22 }
 0x193   : > { %1485 = vmatprep.mubr.msk.bf16.mxu1 %vm1703_vm0, %v1702_v0 }
 0x23a   : > { %v566_v23 = vpop.f32.mrf.mxu1 }
 0x23b   : > { %v572_v24 = vmul.f32 0.35355338, %v566_v23 }
 0x23c   : > { %v1437_v25 = vpop.f32.mrf.mxu1 }
 0x23d   : > { %v573_v26 = vsel %vm525_vm2, %v572_v24, -inf }
 0x23e   : > { %574 = vmax.xlane.f32.xlu1 %v573_v26  ;;  %v569_v27 = vpop.f32.mrf.mxu1 }
 0x240   : > { %v1438_v28 = vpop.f32.mrf.mxu1 }
 0x242   : > { %v679_v29 = vpop.f32.mrf.mxu1 }
 0x243   : > { %v685_v30 = vmul.f32 0.35355338, %v679_v29 }
 0x244   : > { %v1449_v31 = vpop.f32.mrf.mxu1 }
 0x245   : > { %v686_v32 = vsel %vm525_vm2, %v685_v30, -inf }
 0x246   : > { %687 = vmax.xlane.f32.xlu0 %v686_v32  ;;  %v682_v33 = vpop.f32.mrf.mxu1 }
 0x248   : > { %v1450_v34 = vpop.f32.mrf.mxu1 }
 0x24a   : > { %v796_v35 = vpop.f32.mrf.mxu1 }
 0x24b   : > { %v802_v36 = vmul.f32 0.35355338, %v796_v35 }
 0x24c   : > { %v1461_v37 = vpop.f32.mrf.mxu1 }
 0x24d   : > { %v803_v38 = vsel %vm525_vm2, %v802_v36, -inf  ;;  %v1579_v37 = vld [vmem:[%s2062_s3 + $0x8] sm:$0xff]  }
 0x24e   : > { %804 = vmax.xlane.f32.xlu0 %v803_v38  ;;  %v799_v39 = vpop.f32.mrf.mxu1  ;;  %1482 = vmatpush3.bf16.msra.mxu1 %v1579_v37 }
 0x24f   : > { %696 = vrot.lane.b32.xlu1 %v1884_v9, %s1711_s21  ;;  %v1580_v39 = vld [vmem:[%s2062_s3] sm:$0xff]   ;;  %1483 = vmatprep.subr.bf16.mxu1 %v1702_v0 }
 0x250   : > { %v1462_v40 = vpop.f32.mrf.mxu1 }
 0x252   : > { %v913_v41 = vpop.f32.mrf.mxu1  ;;  %1484 = vmatpush3.bf16.msra.mxu1 %v1580_v39 }
 0x253   : > { %v919_v45 = vmul.f32 0.35355338, %v913_v41  ;;  %1497 = vmatprep.subr.bf16.mxu1 %v1702_v0 }
 0x254   : > { %v1473_v42 = vpop.f32.mrf.mxu1 }
 0x255   : > { %v920_v46 = vsel %vm525_vm2, %v919_v45, -inf }
 0x256   : > { %v916_v43 = vpop.f32.mrf.mxu1 }
 0x258   : > { %v1474_v44 = vpop.f32.mrf.mxu1 }
 0x264   : > { %583 = vrot.lane.b32.xlu0 %v1884_v9, %s1712_s20  ;;  %s1717_s20 = smov 24  }
 0x268   : > { %930 = vrot.lane.b32.xlu0 %v1884_v9, %s1713_s5  ;;  %s444_s5 = sand.u32 1, %s1689_s26  }
 0x269   : > { %s1269_s3 = scalar_lea.sflag [#allocation5], %s444_s5 }
 0x273   : > { %921 = vmax.xlane.f32.xlu1 %v920_v46 }
 0x284   : > { %813 = vrot.lane.b32.xlu1 %v1884_v9, %s1714_s22  ;;  %s1359_s22 = sshll.u32 %s444_s5, 3 }
 0x285   : > { %s446_s21 = scalar_lea.vmem [#allocation6], %s1359_s22 }
 0x2c7   : > { %v575_v47 = vpop.xlane.xlu1 %574 }
 0x2c8   : > { %v576_v48 = vsub.f32 %v572_v24, %v575_v47 }
 0x2ca   : > { %v577_v49 = vmul.f32 1.442695, %v576_v48 }
 0x2cb   : > { %v697_v59 = vpop.permute.xlu1 %696 }
 0x2cc   : > { %1587 = vpow2.f32 %v577_v49  ;;  %v702_v61 = vsel %vm588_vm3, %v697_v59, 0 }
 0x2cf   : > { %v688_v50 = vpop.xlane.xlu0 %687 }
 0x2d0   : > { %v689_v51 = vsub.f32 %v685_v30, %v688_v50 }
 0x2d2   : > { %v690_v52 = vmul.f32 1.442695, %v689_v51 }
 0x2d4   : > { %1589 = vpow2.f32 %v690_v52  ;;  %v1373_v52 = vld [vmem:[%s2040_s4] ss:$0 sm:$0xff] }
 0x2d7   : > { %v805_v53 = vpop.xlane.xlu0 %804 }
 0x2d8   : > { %v806_v54 = vsub.f32 %v802_v36, %v805_v53 }
 0x2d9   : > { %v1588_v56 = vpop.eup %1587 }
 0x2da   : > { %v807_v55 = vmul.f32 1.442695, %v806_v54  ;;  %v582_v60 = vpack.c.bf16 %v1588_v56, %v1588_v56  ;;  %v579_v1 = vsel %vm525_vm2, %v1588_v56, 0.0 }
 0x2db   : > { %v584_v57 = vpop.permute.xlu0 %583 }
 0x2dc   : > { %1591 = vpow2.f32 %v807_v55  ;;  %v590_v58 = vsel %vm588_vm3, %v584_v57, 0 }
 0x2dd   : > { %1440 = vmatpush3.bf16.msra.mxu0 %v590_v58 }
 0x2de   : > { %1451 = vmatprep.subr.bf16.mxu0 %v1702_v0 }
 0x2df   : > { %v931_v11 = vpop.permute.xlu0 %930 }
 0x2e0   : > { %1442 = vmatmul.mubr.msk.bf16.vlgmr.msra.gmra.mxu0 %vm525_vm2, %v582_v60  ;;  %v936_v13 = vsel %vm588_vm3, %v931_v11, 0 }
 0x2e1   : > { %v1590_v62 = vpop.eup %1589  ;;  %1452 = vmatpush3.bf16.msra.mxu0 %v702_v61  ;;  %1453 = vmatprep.mubr.msk.bf16.mxu0 %vm1703_vm0, %v1702_v0 }
 0x2e2   : > { %v692_v63 = vsel %vm525_vm2, %v1590_v62, 0.0  ;;  %1463 = vmatprep.subr.bf16.mxu0 %v1702_v0  ;;  %v695_v2 = vpack.c.bf16 %v1590_v62, %v1590_v62 }
 0x2e3   : > { %693 = vadd.xlane.f32.xlu1 %v692_v63 }
 0x2e7   : > { %580 = vadd.xlane.f32.xlu1 %v579_v1 }
 0x2e8   : > { %1454 = vmatmul.mubr.msk.bf16.vlgmr.msra.gmra.mxu0 %vm525_vm2, %v695_v2  ;;  %v1581_v2 = vld [vmem:[#allocation3 + $0x8] sm:$0xff]  }
 0x2e9   : > { %v1592_v4 = vpop.eup %1591  ;;  %1465 = vmatprep.mubr.msk.bf16.mxu0 %vm1703_vm0, %v1702_v0 }
 0x2ea   : > { %v809_v5 = vsel %vm525_vm2, %v1592_v4, 0.0  ;;  %v812_v12 = vpack.c.bf16 %v1592_v4, %v1592_v4  ;;  %v1582_v4 = vld [vmem:[#allocation3] sm:$0xff]  }
 0x2eb   : > { %810 = vadd.xlane.f32.xlu0 %v809_v5  ;;  %v1584_v5 = vld [vmem:[%s2043_s7 + $0x10] sm:$0xff]  }
 0x2fc   : > { %v922_v6 = vpop.xlane.xlu1 %921 }
 0x2fd   : > { %v923_v7 = vsub.f32 %v919_v45, %v922_v6 }
 0x2ff   : > { %v924_v8 = vmul.f32 1.442695, %v923_v7 }
 0x300   : > { %v814_v9 = vpop.permute.xlu1 %813 }
 0x301   : > { %1593 = vpow2.f32 %v924_v8  ;;  %v819_v10 = vsel %vm588_vm3, %v814_v9, 0 }
 0x302   : > { %1464 = vmatpush3.bf16.msra.mxu0 %v819_v10  ;;  %v1377_v10 = vld [vmem:[%s2045_s9] ss:$0 sm:$0xff] }
 0x303   : > { %1475 = vmatprep.subr.bf16.mxu0 %v1702_v0 }
 0x305   : > { %1466 = vmatmul.mubr.msk.bf16.vlgmr.msra.gmra.mxu0 %vm525_vm2, %v812_v12  ;;  %v1378_v12 = vld [vmem:[%s2046_s10] ss:$0 sm:$0xff] }
 0x306   : > { %1476 = vmatpush3.bf16.msra.mxu0 %v936_v13  ;;  %1477 = vmatprep.mubr.msk.bf16.mxu0 %vm1703_vm0, %v1702_v0 }
 0x307   : > { %1489 = vmatprep.subr.bf16.mxu0 %v1702_v0 }
 0x30e   : > { %v1594_v14 = vpop.eup %1593 }
 0x30f   : > { %v926_v15 = vsel %vm525_vm2, %v1594_v14, 0.0  ;;  %v929_v16 = vpack.c.bf16 %v1594_v14, %v1594_v14 }
 0x310   : > { %927 = vadd.xlane.f32.xlu0 %v926_v15 }
 0x311   : > { %1478 = vmatmul.mubr.msk.bf16.vlgmr.msra.gmra.mxu0 %vm525_vm2, %v929_v16  ;;  %v1585_v16 = vld [vmem:[%s2043_s7 + $0x8] sm:$0xff]  }
 0x312   : > { %1493 = vmatprep.mubr.msk.bf16.mxu0 %vm1703_vm0, %v1702_v0  ;;  %1490 = vmatpush3.bf16.msra.mxu0 %v1581_v2 }
 0x313   : > { %1491 = vmatprep.subr.bf16.mxu0 %v1702_v0 }
 0x316   : > { %1492 = vmatpush3.bf16.msra.mxu0 %v1582_v4 }
 0x36c   : > { %v694_v17 = vpop.xlane.xlu1 %693 }
 0x370   : > { %v581_v18 = vpop.xlane.xlu1 %580 }
 0x371   : > { %1595 = vrcp.f32 %v581_v18  ;;  %v1379_v18 = vld [vmem:[%s2042_s6] ss:$0 sm:$0xff] }
 0x372   : > { %1597 = vrcp.f32 %v694_v17  ;;  %v1586_v17 = vld [vmem:[%s2043_s7] sm:$0xff]  }
 0x374   : > { %v811_v31 = vpop.xlane.xlu0 %810 }
 0x375   : > { %1599 = vrcp.f32 %v811_v31 }
 0x37e   : > { %v1596_v19 = vpop.eup %1595 }
 0x37f   : > { %v1598_v25 = vpop.eup %1597 }
 0x382   : > { %v1600_v33 = vpop.eup %1599 }
 0x399   : > { %v928_v32 = vpop.xlane.xlu0 %927 }
 0x39a   : > { %1601 = vrcp.f32 %v928_v32 }
 0x3a0   : > { %v626_v20 = vpop.f32.mrf.mxu0 }
 0x3a1   : > { %v633_v21 = vmul.f32 %v1596_v19, %v626_v20 }
 0x3a2   : > { %v1443_v22 = vpop.f32.mrf.mxu0 }
 0x3a3   : > { %634 = vst.msk [vmem:[#allocation2] sm:$0xff] %vm525_vm2, %v633_v21 }
 0x3a4   : > { %v629_v23 = vpop.f32.mrf.mxu0 }
 0x3a6   : > { %v1444_v24 = vpop.f32.mrf.mxu0 }
 0x3a7   : > { %v1602_v41 = vpop.eup %1601 }
 0x3a8   : > { %v738_v26 = vpop.f32.mrf.mxu0 }
 0x3a9   : > { %v745_v27 = vmul.f32 %v1598_v25, %v738_v26 }
 0x3aa   : > { %v1455_v28 = vpop.f32.mrf.mxu0 }
 0x3ab   : > { %747 = vrot.lane.b32.xlu0 %v745_v27, %s1715_s23 }
 0x3ac   : > { %v741_v29 = vpop.f32.mrf.mxu0 }
 0x3ae   : > { %v1456_v30 = vpop.f32.mrf.mxu0 }
 0x3c5   : > { %v855_v34 = vpop.f32.mrf.mxu0 }
 0x3c6   : > { %v862_v35 = vmul.f32 %v1600_v33, %v855_v34 }
 0x3c7   : > { %v1467_v36 = vpop.f32.mrf.mxu0 }
 0x3c8   : > { %864 = vrot.lane.b32.xlu1 %v862_v35, %s1716_s15 }
 0x3c9   : > { %v858_v38 = vpop.f32.mrf.mxu0 }
 0x3cb   : > { %v1468_v40 = vpop.f32.mrf.mxu0 }
 0x3d1   : > { %v972_v42 = vpop.f32.mrf.mxu0 }
 0x3d2   : > { %v979_v43 = vmul.f32 %v1602_v41, %v972_v42  ;;  %v1389_v42 = vld [vmem:[%s2047_s11] ss:$0 sm:$0xff] }
 0x3d3   : > { %v1479_v44 = vpop.f32.mrf.mxu0 }
 0x3d4   : > { %981 = vrot.lane.b32.xlu1 %v979_v43, %s1717_s20  ;;  %v1390_v44 = vld [vmem:[%s2048_s12] ss:$0 sm:$0xff]  ;;  %s1282_s20 = sshll.u32 %s446_s21, 4  ;;  %s1283_s20 = int_to_ptr.vmem [resolvable:$true] %s1282_s20 }
 0x3d5   : > { %v975_v45 = vpop.f32.mrf.mxu0  ;;  %s1633_s23 = scalar_lea.vmem %s1283_s20, 128  ;;  %p1640_p11 = scmp.lt.s32.totalorder %s1283_s20, %s1638_s30 }
 0x3d6   : > { %p1634_p6 = scmp.ne.s32.totalorder %s1283_s20, %s1633_s23  ;;  %p1641_p12 = scmp.lt.s32.totalorder %s1639_s29, %s1633_s23 }
 0x3d7   : > { %v1480_v46 = vpop.f32.mrf.mxu0 }
 0x3d8   : > { %p1635_p9 = pnand %p1634_p6, %p1827_p5  ;;  %p1642_p13 = por %p1641_p12, %p1640_p11 }
 0x3da   : > { %p1636_p10 = pneg %p1635_p9 }
 0x3dc   : > { %p1643_p0 = pnand %p1642_p13, %p1636_p10 }
 0x41d   : > { %v748_v47 = vpop.permute.xlu0 %747 }
 0x41e   : > { %751 = vst.msk [vmem:[#allocation2] sm:$0xff] %vm750_vm4, %v748_v47 }
 0x43a   : > { %v865_v48 = vpop.permute.xlu1 %864 }
 0x43b   : > { %868 = vst.msk [vmem:[#allocation2] sm:$0xff] %vm867_vm5, %v865_v48 }
 0x446   : > { %v982_v49 = vpop.permute.xlu1 %981 }
 0x447   : > { %985 = vst.msk [vmem:[#allocation2] sm:$0xff] %vm984_vm6, %v982_v49 }
 0x44e   : > { %v986_v50 = vld [vmem:[#allocation2] sm:$0xff] }
 0x44f   : > { %v987_v51 = vpack.c.bf16 %v986_v50, %v986_v50 }
 0x451   : > { %1486 = vmatmul.mubr.msk.bf16.vlgmr.msra.gmra.mxu1 %vm477_vm1, %v987_v51 }
 0x452   : > { %1505 = vmatprep.mubr.msk.bf16.mxu1 %vm1703_vm0, %v1702_v0 }
 0x511   : > { %v1048_v53 = vpop.f32.mrf.mxu1 }
 0x512   : > { %v1049_v54 = vadd.f32 %v1373_v52, %v1048_v53 }
 0x513   : > { %v1487_v55 = vpop.f32.mrf.mxu1 }
 0x514   : > { %v1054_v56 = vadd.f32 %v1049_v54, %v1872_v3  ;;  %v1583_v3 = vld [vmem:[%s2043_s7 + $0x18] sm:$0xff]  }
 0x515   : > { %v1051_v57 = vpop.f32.mrf.mxu1  ;;  %1498 = vmatpush3.bf16.msra.mxu1 %v1583_v3 }
 0x516   : > { %v1055_v58 = vsel %vm477_vm1, %v1054_v56, 0.0  ;;  %1499 = vmatprep.subr.bf16.mxu1 %v1702_v0 }
 0x517   : > { %1056 = vadd.xlane.f32.xlu0 %v1055_v58  ;;  %v1488_v59 = vpop.f32.mrf.mxu1 }
 0x519   : > { %1500 = vmatpush3.bf16.msra.mxu1 %v1584_v5 }
 0x51a   : > { %1501 = vmatprep.subr.bf16.mxu1 %v1702_v0 }
 0x51d   : > { %1502 = vmatpush3.bf16.msra.mxu1 %v1585_v16 }
 0x51e   : > { %1503 = vmatprep.subr.bf16.mxu1 %v1702_v0  ;;  %v1383_v0 = vld [vmem:[%s2044_s8] ss:$0 sm:$0xff] }
 0x521   : > { %1504 = vmatpush3.bf16.msra.mxu1 %v1586_v17 }
 0x5a0   : > { %v1057_v60 = vpop.xlane.xlu0 %1056 }
 0x5a1   : > { %v1059_v61 = vmul.f32 0.03125, %v1057_v60 }
 0x5a3   : > { %v1060_v62 = vsub.f32 %v1054_v56, %v1059_v61 }
 0x5a5   : > { %v1061_v63 = vmul.f32 %v1060_v62, %v1060_v62 }
 0x5a7   : > { %v1062_v1 = vsel %vm477_vm1, %v1061_v63, 0.0 }
 0x5a8   : > { %1063 = vadd.xlane.f32.xlu1 %v1062_v1 }
 0x631   : > { %v1064_v6 = vpop.xlane.xlu1 %1063 }
 0x632   : > { %v1065_v7 = vmul.f32 0.03125, %v1064_v6 }
 0x634   : > { %v1066_v8 = vadd.f32 1e-05, %v1065_v7 }
 0x636   : > { %1603 = vrsqrt.f32 %v1066_v8 }
 0x643   : > { %v1604_v9 = vpop.eup %1603 }
 0x644   : > { %v1068_v11 = vmul.f32 %v1604_v9, %v1060_v62 }
 0x646   : > { %v1076_v13 = vmul.f32 %v1377_v10, %v1068_v11 }
 0x648   : > { %v1084_v14 = vadd.f32 %v1378_v12, %v1076_v13 }
 0x64a   : > { %v1085_v15 = vpack.c.bf16 %v1084_v14, %v1084_v14 }
 0x64c   : > { %1494 = vmatmul.mubr.msk.bf16.vlgmr.msra.gmra.mxu0 %vm477_vm1, %v1085_v15 }
 0x70c   : > { %v1146_v19 = vpop.f32.mrf.mxu0 }
 0x70d   : > { %v1147_v20 = vadd.f32 %v1379_v18, %v1146_v19 }
 0x70e   : > { %v1495_v21 = vpop.f32.mrf.mxu0 }
 0x70f   : > { %v1152_v22 = vmax.f32 %v1147_v20, 0.0 }
 0x710   : > { %v1149_v23 = vpop.f32.mrf.mxu0 }
 0x711   : > { %v1153_v24 = vpack.c.bf16 %v1152_v22, %v1152_v22 }
 0x712   : > { %v1496_v25 = vpop.f32.mrf.mxu0 }
 0x713   : > { %1506 = vmatmul.mubr.msk.bf16.vlgmr.msra.gmra.mxu1 %vm1193_vm7, %v1153_v24 }
 0x7d3   : > { %v1231_v26 = vpop.f32.mrf.mxu1 }
 0x7d4   : > { %v1232_v27 = vadd.f32 %v1383_v0, %v1231_v26 }
 0x7d5   : > { %v1507_v28 = vpop.f32.mrf.mxu1 }
 0x7d6   : > { %v1237_v29 = vadd.f32 %v1232_v27, %v1084_v14 }
 0x7d7   : > { %v1234_v30 = vpop.f32.mrf.mxu1 }
 0x7d8   : > { %v1238_v31 = vsel %vm477_vm1, %v1237_v29, 0.0 }
 0x7d9   : > { %1239 = vadd.xlane.f32.xlu0 %v1238_v31  ;;  %v1508_v32 = vpop.f32.mrf.mxu1 }
 0x862   : > { %v1240_v33 = vpop.xlane.xlu0 %1239 }
 0x863   : > { %v1241_v34 = vmul.f32 0.03125, %v1240_v33 }
 0x865   : > { %v1242_v35 = vsub.f32 %v1237_v29, %v1241_v34 }
 0x867   : > { %v1243_v36 = vmul.f32 %v1242_v35, %v1242_v35 }
 0x869   : > { %v1244_v37 = vsel %vm477_vm1, %v1243_v36, 0.0 }
 0x86a   : > { %1245 = vadd.xlane.f32.xlu0 %v1244_v37 }
 0x8f3   : > { %v1246_v38 = vpop.xlane.xlu0 %1245 }
 0x8f4   : > { %v1247_v39 = vmul.f32 0.03125, %v1246_v38 }
 0x8f6   : > { %v1248_v40 = vadd.f32 1e-05, %v1247_v39 }
 0x8f8   : > { %1605 = vrsqrt.f32 %v1248_v40 }
 0x905   : > { %v1606_v41 = vpop.eup %1605 }
 0x906   : > { %v1250_v43 = vmul.f32 %v1606_v41, %v1242_v35 }
 0x908   : > { %v1258_v45 = vmul.f32 %v1389_v42, %v1250_v43 }
 0x90a   : > { %v1266_v46 = vadd.f32 %v1390_v44, %v1258_v45 }
 0x90c   : > { %1267 = vst.msk [vmem:[%s446_s21] sm:$0xff] %vm477_vm1, %v1266_v46 }
 0x90d   : > { %1646 = shalt.err (!%p1643_p0)
}
 0x90e   : > { %s1647_s0 = scalar_lea.hbm %s1280_s2, 128  ;;  %s1651_s22 = scalar_lea.hbm %s2049_s13, 256 }
 0x90f   : > { %p1648_p1 = scmp.ne.s32.totalorder %s1280_s2, %s1647_s0  ;;  %p1652_p4 = scmp.lt.s32.totalorder %s1280_s2, %s2049_s13 }
 0x910   : > { %p1653_p7 = scmp.lt.s32.totalorder %s1651_s22, %s1647_s0 }
 0x911   : > { %p1649_p2 = pnand %p1648_p1, %p1827_p5 }
 0x912   : > { %p1654_p8 = por %p1653_p7, %p1652_p4 }
 0x913   : > { %p1650_p3 = pneg %p1649_p2 }
 0x915   : > { %p1655_p6 = pnand %p1654_p8, %p1650_p3 }
 0x917   : > { %1658 = shalt.err (!%p1655_p6)
}
 0x918   : > { %1513 = dma.vmem_to_hbm [thread:$0]  (%p1827_p5), %s1283_s20, 128, %s1280_s2, %s1269_s3  }
 0x919 PF: > { %p1525_p9 = scmp.ge.s32.totalorder %s1697_s28, 2  ;;  %s1294_s21 = sand.u32 1, %s1685_s25  }
 0x91a   : > { %p2063_p10 = scmp.ne.s32.totalorder %s2056_s19, 0  ;;  %s1295_s23 = scalar_lea.sflag [#allocation5], %s1294_s21 }
 0x91c   : > { %p1520_p11 = pnand %p1525_p9, %p2063_p10 }
 0x91e   : > { %p1521_p12 = pneg %p1520_p11 }
 0x920   : > { %1680 = dma.done.wait (%p1521_p12), %s1295_s23, 128  }
 0x921   : > { %1682 = vsyncadd (%p1521_p12), %s1295_s23, 4294967168  ;;  %p24_p13 = scmp.ge.s32.totalorder %s1814_s14, 4   ;;  %s2064_s25 = smov %s1689_s26 }
 0x922   : > { %s2065_s26 = smov %s1693_s27  ;;  %s2066_s27 = smov %s1825_s17 }
 0x923   : > { %s2067_s28 = smov %s1814_s14  ;;  %26 = sbr.rel (!%p24_p13) target bundleno = 10 (0xa), region = 112 }
 0x928   :  { %1300 = vsyncpa [#allocation4], 1 }
 0x929   :  { %1302 = vsyncpa [#allocation4 + $0x1], 1 }
 0x92a   :  { %1303 = vsyncpa [#allocation5], 1 }
 0x92b   :  { %1305 = vsyncpa [#allocation5 + $0x1], 1 }

// kernel: tpu_custom_call.1
= control target key start
LH: loop header
LB: loop body
LE: loop exit
PB: predicated region body
PF: predicated region fallthrough
CT: control target
= control target key end

     0   :  { %s2036_s0 = inlined_call_operand.vmem [shape: f32[2,8,32], index: 0, kind: input, shape index: {}]   ;;  %s2037_s1 = inlined_call_operand.vmem [shape: bf16[32,96], index: 1, kind: input, shape index: {}]   ;;  %s2038_s2 = inlined_call_operand.vmem [shape: f32[1,96], index: 2, kind: input, shape index: {}]   ;;  %s2039_s3 = inlined_call_operand.vmem [shape: bf16[32,32], index: 3, kind: input, shape index: {}]   ;;  %s2040_s4 = inlined_call_operand.vmem [shape: f32[1,32], index: 4, kind: input, shape index: {}]   ;;  %s2041_s5 = inlined_call_operand.hbm [shape: bf16[32,64], index: 5, kind: input, shape index: {}]   ;;  %s2042_s6 = inlined_call_operand.vmem [shape: f32[1,64], index: 6, kind: input, shape index: {}]   ;;  %s2043_s7 = inlined_call_operand.vmem [shape: bf16[64,32], index: 7, kind: input, shape index: {}]   ;;  %s2044_s8 = inlined_call_operand.vmem [shape: f32[1,32], index: 8, kind: input, shape index: {}]   ;;  %s2045_s9 = inlined_call_operand.vmem [shape: f32[1,32], index: 9, kind: input, shape index: {}]   ;;  %s2046_s10 = inlined_call_operand.vmem [shape: f32[1,32], index: 10, kind: input, shape index: {}]   ;;  %s2047_s11 = inlined_call_operand.vmem [shape: f32[1,32], index: 11, kind: input, shape index: {}]   ;;  %s2048_s12 = inlined_call_operand.vmem [shape: f32[1,32], index: 12, kind: input, shape index: {}]   ;;  %s2049_s13 = inlined_call_operand.hbm [shape: f32[2,8,32], index: 13, kind: output, shape index: {}]  }
   0x1   :  { %2050 = sst [smem:[#allocation9_spill]] %s2036_s0 }
   0x2   :  { %2051 = sst [smem:[#allocation10_spill]] %s2037_s1 }
   0x3   :  { %2052 = sst [smem:[#allocation11_spill]] %s2038_s2 }
   0x4   :  { %2053 = sst [smem:[#allocation12_spill]] %s2039_s3 }
   0x5   :  { %2054 = sst [smem:[#allocation13_spill]] %s2041_s5 }
   0x6   :  { %18 = vsyncpa [#allocation4], 0 }
   0x7   :  { %19 = vsyncpa [#allocation5], 0 }
   0x8   :  { %21 = vsyncpa [#allocation5 + $0x1], 0  ;;  %s1789_s25 = smov 0   ;;  %s1791_s26 = smov 0  }
   0x9   :  { %s1793_s27 = smov 0   ;;  %s1795_s28 = smov 0  }
   0xa LB: > { %s1810_s29 = sadd.s32 4294967295, %s1697_s28   ;;  %s1353_s30 = sadd.s32 4294967294, %s1697_s28   ;;  %s1697_s28 = sphi %s1795_s28, %s2067_s28   ;;  %s1693_s27 = sphi %s1793_s27, %s2066_s27   ;;  %s1689_s26 = sphi %s1791_s26, %s2065_s26   ;;  %s1685_s25 = sphi %s1789_s25, %s2064_s25  }
   0xb   : > { %s1814_s14 = sadd.s32 1, %s1697_s28   ;;  %s312_s15 = sadd.s32 1, %s1693_s27 }
   0xc   : > { %s309_s16 = ssub.s32 %s1697_s28, %s1814_s14  ;;  %p322_p0 = scmp.ne.s32.totalorder %s1693_s27, %s1689_s26 }
   0xd   : > { %p310_p1 = scmp.eq.s32.totalorder %s309_s16, 0  ;;  %p323_p2 = scmp.eq.s32.totalorder %s1810_s29, 1 }
   0xe   : > { %p328_p3 = scmp.ne.s32.totalorder %s1689_s26, %s1685_s25  ;;  %p329_p4 = scmp.eq.s32.totalorder %s1353_s30, 1 }
   0xf   : > { %s1825_s17 = scalar_select %p310_p1, %s1693_s27, %s312_s15  }
  0x10   : > { %p1827_p5 = por %p323_p2, %p322_p0  ;;  %p1831_p6 = por %p329_p4, %p328_p3 }
  0x11   : > { %p1354_p7 = scmp.ge.s32.totalorder %s1697_s28, 1  ;;  %p336_p8 = scmp.lt.s32.totalorder %s1697_s28, 3 }
  0x12   : > { %s2056_s19 = scalar_select %p1831_p6, 1, 0 }
  0x13   : > { %p1523_p9 = scmp.eq.s32.totalorder %s1810_s29, 0  ;;  %p1838_p10 = pnand %p1354_p7, %p336_p8 }
  0x14   : > { %s1699_s21 = smov [#allocation3]  }
  0x15   : > { %s360_s22 = sshll.u32 %s1699_s21, 4  ;;  %p1515_p11 = pneg %p1838_p10  ;;  %s361_s22 = int_to_ptr.vmem [resolvable:$true] %s360_s22 }
  0x16   : > { %s1618_s23 = scalar_lea.vmem %s361_s22, 256  ;;  %p1626_p3 = scmp.lt.s32.totalorder %s361_s22, %s361_s22 }
  0x17   : > { %p1516_p12 = pnand %p1523_p9, %p1515_p11  ;;  %p1619_p0 = scmp.ne.s32.totalorder %s361_s22, %s1618_s23 }
  0x18   : > { %p1627_p4 = scmp.lt.s32.totalorder %s1618_s23, %s1618_s23 }
  0x19   : > { %p1609_p13 = pneg %p1516_p12 }
  0x1a   : > { %p1628_p6 = por %p1627_p4, %p1626_p3 }
  0x1b   : > { %p1621_p1 = pnand %p1619_p0, %p1609_p13 }
  0x1d   : > { %p1622_p2 = pneg %p1621_p1 }
  0x1f   : > { %p1629_p7 = pnand %p1628_p6, %p1622_p2 }
  0x21   : > { %1632 = shalt.err (!%p1629_p7)
}
  0x22   : > { %s1700_s24 = smov 64   ;;  %s1701_s30 = smov 4  }
  0x23   : > { %s2058_s5 = sld [smem:[#allocation13_spill]] }
  0x25   : > { %404 = sbr.rel (%p1838_p10) target bundleno = 2329 (0x919), region = 72 }
  0x29   : > { %1518 = dma.hbm_to_vmem [thread:$0]  (!%p1516_p12), %s2058_s5, 256, %s361_s22, [#allocation4], %s1700_s24, %s1700_s24, %s1701_s30  }
  0x2a   : > { %1676 = dma.done.wait (%p1523_p9), [#allocation4], 256  }
  0x2b   : > { %1678 = vsyncadd (%p1523_p9), [#allocation4], 4294967040  ;;  %p447_p8 = scmp.lt.s32.totalorder %s1810_s29, 1  ;;  %v1702_v0 = vmov 0.0   ;;  %vm1703_vm0 = vmmov 0   ;;  %s2059_s0 = sld [smem:[#allocation9_spill]] }
  0x2c   : > { %1425 = vmatprep.subr.bf16.mxu0 %v1702_v0  ;;  %1429 = vmatprep.mubr.msk.bf16.mxu0 %vm1703_vm0, %v1702_v0  ;;  %s2060_s1 = sld [smem:[#allocation10_spill]]  ;;  %vm477_vm1 = vcmask 261120   ;;  %s1704_s5 = smov 120   ;;  %vm525_vm2 = vcmask 64512   ;;  %vm588_vm3 = vcmask 1043456   ;;  %vm750_vm4 = vcmask 130112  }
  0x2d   : > { %s448_s21 = scalar_select %p447_p8, %s1810_s29, 1  ;;  %1433 = vmatprep.subr.bf16.mxu1 %v1702_v0  ;;  %1435 = vmatprep.mubr.msk.bf16.mxu1 %vm1703_vm0, %v1702_v0  ;;  %vm867_vm5 = vcmask 195712   ;;  %vm984_vm6 = vcmask 261312   ;;  %vm1193_vm7 = vcmask 523264  }
  0x2e   : > { %s2061_s2 = sld [smem:[#allocation11_spill]]  ;;  %s1705_s22 = smov 96  }
  0x2f   : > { %s1360_s20 = sshll.u32 %s448_s21, 3  ;;  %s1706_s23 = smov 80  }
  0x30   : > { %s1708_s30 = smov 72   ;;  %s1709_s15 = smov 112  }
  0x31   : > { %s450_s24 = scalar_lea.vmem %s2059_s0, %s1360_s20  ;;  %s1710_s16 = smov 104  }
  0x32   : > { %v1577_v1 = vld [vmem:[%s2060_s1 + $0x8] sm:$0xff]   ;;  %v1578_v2 = vld [vmem:[%s2060_s1] sm:$0xff]   ;;  %s1711_s21 = smov 56   ;;  %s1712_s20 = smov 64  }
  0x33   : > { %1426 = vmatpush3.bf16.msra.mxu0 %v1577_v1  ;;  %v1872_v3 = vld [vmem:[%s450_s24] sm:$0xff]  ;;  %s1707_s24 = smov 88   ;;  %s2062_s3 = sld [smem:[#allocation12_spill]] }
  0x34   : > { %1427 = vmatprep.subr.bf16.mxu0 %v1702_v0  ;;  %v453_v4 = vpack.c.bf16 %v1872_v3, %v1872_v3  ;;  %v1361_v5 = vld [vmem:[%s2061_s2] ss:$0 sm:$0xff] }
  0x37   : > { %1428 = vmatpush3.bf16.msra.mxu0 %v1578_v2 }
  0x38   : > { %1439 = vmatprep.subr.bf16.mxu0 %v1702_v0 }
  0x3a   : > { %1430 = vmatmul.mubr.msk.bf16.vlgmr.msra.gmra.mxu0 %vm477_vm1, %v453_v4 }
  0x3b   : > { %1441 = vmatprep.mubr.msk.bf16.mxu0 %vm1703_vm0, %v1702_v0 }
  0xfa   : > { %v515_v6 = vpop.f32.mrf.mxu0 }
  0xfb   : > { %v516_v7 = vadd.f32 %v1361_v5, %v515_v6 }
  0xfc   : > { %v1431_v8 = vpop.f32.mrf.mxu0 }
  0xfd   : > { %v1884_v9 = vpack.c.bf16 %v516_v7, %v516_v7 }
  0xfe   : > { %v518_v10 = vpop.f32.mrf.mxu0 }
  0xff   : > { %635 = vrot.lane.b32.xlu1 %v1884_v9, %s1704_s5  ;;  %523 = vrot.lane.b32.xlu0 %v1884_v9, %s1705_s22  ;;  %s1713_s5 = smov 40   ;;  %s1714_s22 = smov 48  }
 0x100   : > { %v1432_v11 = vpop.f32.mrf.mxu0 }
 0x103   : > { %754 = vrot.lane.b32.xlu1 %v1884_v9, %s1706_s23  ;;  %637 = vrot.lane.b32.xlu0 %v1884_v9, %s1707_s24  ;;  %s1715_s23 = smov 8   ;;  %s1718_s24 = smov [#allocation6]  }
 0x107   : > { %871 = vrot.lane.b32.xlu1 %v1884_v9, %s1708_s30  ;;  %752 = vrot.lane.b32.xlu0 %v1884_v9, %s1709_s15  ;;  %s1716_s15 = smov 16   ;;  %s1637_s30 = sshll.u32 %s1718_s24, 4  ;;  %s1638_s30 = int_to_ptr.vmem [resolvable:$false] %s1637_s30 }
 0x10b   : > { %869 = vrot.lane.b32.xlu0 %v1884_v9, %s1710_s16  ;;  %s1392_s16 = sshll.u32 %s1810_s29, 7  ;;  %s1639_s29 = scalar_lea.vmem %s1638_s30, 256 }
 0x10c   : > { %s1280_s2 = scalar_lea.hbm %s2049_s13, %s1392_s16 }
 0x171   : > { %v524_v12 = vpop.permute.xlu0 %523  ;;  %v636_v15 = vpop.permute.xlu1 %635 }
 0x172   : > { %v530_v13 = vsel %vm525_vm2, %v524_v12, 0 }
 0x173   : > { %1434 = vmatpush3.bf16.xpose.msra.mxu1 %v530_v13 }
 0x174   : > { %1445 = vmatprep.subr.bf16.mxu1 %v1702_v0 }
 0x175   : > { %v638_v14 = vpop.permute.xlu0 %637  ;;  %v755_v17 = vpop.permute.xlu1 %754 }
 0x176   : > { %v643_v16 = vsel %vm525_vm2, %v638_v14, 0  ;;  %v760_v18 = vsel %vm525_vm2, %v755_v17, 0 }
 0x179   : > { %v872_v19 = vpop.permute.xlu1 %871  ;;  %v753_v20 = vpop.permute.xlu0 %752 }
 0x17a   : > { %1436 = vmatmul.mubr.msk.bf16.vlgmr.msra.gmra.mxu1 %vm525_vm2, %v1884_v9  ;;  %v877_v21 = vsel %vm525_vm2, %v872_v19, 0 }
 0x17b   : > { %1446 = vmatpush3.bf16.xpose.msra.mxu1 %v643_v16  ;;  %1447 = vmatprep.mubr.msk.bf16.mxu1 %vm1703_vm0, %v1702_v0 }
 0x17c   : > { %1457 = vmatprep.subr.bf16.mxu1 %v1702_v0 }
 0x17d   : > { %v870_v22 = vpop.permute.xlu0 %869 }
 0x182   : > { %1448 = vmatmul.mubr.msk.bf16.vlgmr.msra.gmra.mxu1 %vm525_vm2, %v636_v15 }
 0x183   : > { %1458 = vmatpush3.bf16.xpose.msra.mxu1 %v760_v18  ;;  %1459 = vmatprep.mubr.msk.bf16.mxu1 %vm1703_vm0, %v1702_v0 }
 0x184   : > { %1469 = vmatprep.subr.bf16.mxu1 %v1702_v0 }
 0x18a   : > { %1460 = vmatmul.mubr.msk.bf16.vlgmr.msra.gmra.mxu1 %vm525_vm2, %v753_v20 }
 0x18b   : > { %1470 = vmatpush3.bf16.xpose.msra.mxu1 %v877_v21  ;;  %1471 = vmatprep.mubr.msk.bf16.mxu1 %vm1703_vm0, %v1702_v0 }
 0x18c   : > { %1481 = vmatprep.subr.bf16.mxu1 %v1702_v0 }
 0x192   : > { %1472 = vmatmul.mubr.msk.bf16.vlgmr.msra.gmra.mxu1 %vm525_vm2, %v870_v22 }
 0x193   : > { %1485 = vmatprep.mubr.msk.bf16.mxu1 %vm1703_vm0, %v1702_v0 }
 0x23a   : > { %v566_v23 = vpop.f32.mrf.mxu1 }
 0x23b   : > { %v572_v24 = vmul.f32 0.35355338, %v566_v23 }
 0x23c   : > { %v1437_v25 = vpop.f32.mrf.mxu1 }
 0x23d   : > { %v573_v26 = vsel %vm525_vm2, %v572_v24, -inf }
 0x23e   : > { %574 = vmax.xlane.f32.xlu1 %v573_v26  ;;  %v569_v27 = vpop.f32.mrf.mxu1 }
 0x240   : > { %v1438_v28 = vpop.f32.mrf.mxu1 }
 0x242   : > { %v679_v29 = vpop.f32.mrf.mxu1 }
 0x243   : > { %v685_v30 = vmul.f32 0.35355338, %v679_v29 }
 0x244   : > { %v1449_v31 = vpop.f32.mrf.mxu1 }
 0x245   : > { %v686_v32 = vsel %vm525_vm2, %v685_v30, -inf }
 0x246   : > { %687 = vmax.xlane.f32.xlu0 %v686_v32  ;;  %v682_v33 = vpop.f32.mrf.mxu1 }
 0x248   : > { %v1450_v34 = vpop.f32.mrf.mxu1 }
 0x24a   : > { %v796_v35 = vpop.f32.mrf.mxu1 }
 0x24b   : > { %v802_v36 = vmul.f32 0.35355338, %v796_v35 }
 0x24c   : > { %v1461_v37 = vpop.f32.mrf.mxu1 }
 0x24d   : > { %v803_v38 = vsel %vm525_vm2, %v802_v36, -inf  ;;  %v1579_v37 = vld [vmem:[%s2062_s3 + $0x8] sm:$0xff]  }
 0x24e   : > { %804 = vmax.xlane.f32.xlu0 %v803_v38  ;;  %v799_v39 = vpop.f32.mrf.mxu1  ;;  %1482 = vmatpush3.bf16.msra.mxu1 %v1579_v37 }
 0x24f   : > { %696 = vrot.lane.b32.xlu1 %v1884_v9, %s1711_s21  ;;  %v1580_v39 = vld [vmem:[%s2062_s3] sm:$0xff]   ;;  %1483 = vmatprep.subr.bf16.mxu1 %v1702_v0 }
 0x250   : > { %v1462_v40 = vpop.f32.mrf.mxu1 }
 0x252   : > { %v913_v41 = vpop.f32.mrf.mxu1  ;;  %1484 = vmatpush3.bf16.msra.mxu1 %v1580_v39 }
 0x253   : > { %v919_v45 = vmul.f32 0.35355338, %v913_v41  ;;  %1497 = vmatprep.subr.bf16.mxu1 %v1702_v0 }
 0x254   : > { %v1473_v42 = vpop.f32.mrf.mxu1 }
 0x255   : > { %v920_v46 = vsel %vm525_vm2, %v919_v45, -inf }
 0x256   : > { %v916_v43 = vpop.f32.mrf.mxu1 }
 0x258   : > { %v1474_v44 = vpop.f32.mrf.mxu1 }
 0x264   : > { %583 = vrot.lane.b32.xlu0 %v1884_v9, %s1712_s20  ;;  %s1717_s20 = smov 24  }
 0x268   : > { %930 = vrot.lane.b32.xlu0 %v1884_v9, %s1713_s5  ;;  %s444_s5 = sand.u32 1, %s1689_s26  }
 0x269   : > { %s1269_s3 = scalar_lea.sflag [#allocation5], %s444_s5 }
 0x273   : > { %921 = vmax.xlane.f32.xlu1 %v920_v46 }
 0x284   : > { %813 = vrot.lane.b32.xlu1 %v1884_v9, %s1714_s22  ;;  %s1359_s22 = sshll.u32 %s444_s5, 3 }
 0x285   : > { %s446_s21 = scalar_lea.vmem [#allocation6], %s1359_s22 }
 0x2c7   : > { %v575_v47 = vpop.xlane.xlu1 %574 }
 0x2c8   : > { %v576_v48 = vsub.f32 %v572_v24, %v575_v47 }
 0x2ca   : > { %v577_v49 = vmul.f32 1.442695, %v576_v48 }
 0x2cb   : > { %v697_v59 = vpop.permute.xlu1 %696 }
 0x2cc   : > { %1587 = vpow2.f32 %v577_v49  ;;  %v702_v61 = vsel %vm588_vm3, %v697_v59, 0 }
 0x2cf   : > { %v688_v50 = vpop.xlane.xlu0 %687 }
 0x2d0   : > { %v689_v51 = vsub.f32 %v685_v30, %v688_v50 }
 0x2d2   : > { %v690_v52 = vmul.f32 1.442695, %v689_v51 }
 0x2d4   : > { %1589 = vpow2.f32 %v690_v52  ;;  %v1373_v52 = vld [vmem:[%s2040_s4] ss:$0 sm:$0xff] }
 0x2d7   : > { %v805_v53 = vpop.xlane.xlu0 %804 }
 0x2d8   : > { %v806_v54 = vsub.f32 %v802_v36, %v805_v53 }
 0x2d9   : > { %v1588_v56 = vpop.eup %1587 }
 0x2da   : > { %v807_v55 = vmul.f32 1.442695, %v806_v54  ;;  %v582_v60 = vpack.c.bf16 %v1588_v56, %v1588_v56  ;;  %v579_v1 = vsel %vm525_vm2, %v1588_v56, 0.0 }
 0x2db   : > { %v584_v57 = vpop.permute.xlu0 %583 }
 0x2dc   : > { %1591 = vpow2.f32 %v807_v55  ;;  %v590_v58 = vsel %vm588_vm3, %v584_v57, 0 }
 0x2dd   : > { %1440 = vmatpush3.bf16.msra.mxu0 %v590_v58 }
 0x2de   : > { %1451 = vmatprep.subr.bf16.mxu0 %v1702_v0 }
 0x2df   : > { %v931_v11 = vpop.permute.xlu0 %930 }
 0x2e0   : > { %1442 = vmatmul.mubr.msk.bf16.vlgmr.msra.gmra.mxu0 %vm525_vm2, %v582_v60  ;;  %v936_v13 = vsel %vm588_vm3, %v931_v11, 0 }
 0x2e1   : > { %v1590_v62 = vpop.eup %1589  ;;  %1452 = vmatpush3.bf16.msra.mxu0 %v702_v61  ;;  %1453 = vmatprep.mubr.msk.bf16.mxu0 %vm1703_vm0, %v1702_v0 }
 0x2e2   : > { %v692_v63 = vsel %vm525_vm2, %v1590_v62, 0.0  ;;  %1463 = vmatprep.subr.bf16.mxu0 %v1702_v0  ;;  %v695_v2 = vpack.c.bf16 %v1590_v62, %v1590_v62 }
 0x2e3   : > { %693 = vadd.xlane.f32.xlu1 %v692_v63 }
 0x2e7   : > { %580 = vadd.xlane.f32.xlu1 %v579_v1 }
 0x2e8   : > { %1454 = vmatmul.mubr.msk.bf16.vlgmr.msra.gmra.mxu0 %vm525_vm2, %v695_v2  ;;  %v1581_v2 = vld [vmem:[#allocation3 + $0x8] sm:$0xff]  }
 0x2e9   : > { %v1592_v4 = vpop.eup %1591  ;;  %1465 = vmatprep.mubr.msk.bf16.mxu0 %vm1703_vm0, %v1702_v0 }
 0x2ea   : > { %v809_v5 = vsel %vm525_vm2, %v1592_v4, 0.0  ;;  %v812_v12 = vpack.c.bf16 %v1592_v4, %v1592_v4  ;;  %v1582_v4 = vld [vmem:[#allocation3] sm:$0xff]  }
 0x2eb   : > { %810 = vadd.xlane.f32.xlu0 %v809_v5  ;;  %v1584_v5 = vld [vmem:[%s2043_s7 + $0x10] sm:$0xff]  }
 0x2fc   : > { %v922_v6 = vpop.xlane.xlu1 %921 }
 0x2fd   : > { %v923_v7 = vsub.f32 %v919_v45, %v922_v6 }
 0x2ff   : > { %v924_v8 = vmul.f32 1.442695, %v923_v7 }
 0x300   : > { %v814_v9 = vpop.permute.xlu1 %813 }
 0x301   : > { %1593 = vpow2.f32 %v924_v8  ;;  %v819_v10 = vsel %vm588_vm3, %v814_v9, 0 }
 0x302   : > { %1464 = vmatpush3.bf16.msra.mxu0 %v819_v10  ;;  %v1377_v10 = vld [vmem:[%s2045_s9] ss:$0 sm:$0xff] }
 0x303   : > { %1475 = vmatprep.subr.bf16.mxu0 %v1702_v0 }
 0x305   : > { %1466 = vmatmul.mubr.msk.bf16.vlgmr.msra.gmra.mxu0 %vm525_vm2, %v812_v12  ;;  %v1378_v12 = vld [vmem:[%s2046_s10] ss:$0 sm:$0xff] }
 0x306   : > { %1476 = vmatpush3.bf16.msra.mxu0 %v936_v13  ;;  %1477 = vmatprep.mubr.msk.bf16.mxu0 %vm1703_vm0, %v1702_v0 }
 0x307   : > { %1489 = vmatprep.subr.bf16.mxu0 %v1702_v0 }
 0x30e   : > { %v1594_v14 = vpop.eup %1593 }
 0x30f   : > { %v926_v15 = vsel %vm525_vm2, %v1594_v14, 0.0  ;;  %v929_v16 = vpack.c.bf16 %v1594_v14, %v1594_v14 }
 0x310   : > { %927 = vadd.xlane.f32.xlu0 %v926_v15 }
 0x311   : > { %1478 = vmatmul.mubr.msk.bf16.vlgmr.msra.gmra.mxu0 %vm525_vm2, %v929_v16  ;;  %v1585_v16 = vld [vmem:[%s2043_s7 + $0x8] sm:$0xff]  }
 0x312   : > { %1493 = vmatprep.mubr.msk.bf16.mxu0 %vm1703_vm0, %v1702_v0  ;;  %1490 = vmatpush3.bf16.msra.mxu0 %v1581_v2 }
 0x313   : > { %1491 = vmatprep.subr.bf16.mxu0 %v1702_v0 }
 0x316   : > { %1492 = vmatpush3.bf16.msra.mxu0 %v1582_v4 }
 0x36c   : > { %v694_v17 = vpop.xlane.xlu1 %693 }
 0x370   : > { %v581_v18 = vpop.xlane.xlu1 %580 }
 0x371   : > { %1595 = vrcp.f32 %v581_v18  ;;  %v1379_v18 = vld [vmem:[%s2042_s6] ss:$0 sm:$0xff] }
 0x372   : > { %1597 = vrcp.f32 %v694_v17  ;;  %v1586_v17 = vld [vmem:[%s2043_s7] sm:$0xff]  }
 0x374   : > { %v811_v31 = vpop.xlane.xlu0 %810 }
 0x375   : > { %1599 = vrcp.f32 %v811_v31 }
 0x37e   : > { %v1596_v19 = vpop.eup %1595 }
 0x37f   : > { %v1598_v25 = vpop.eup %1597 }
 0x382   : > { %v1600_v33 = vpop.eup %1599 }
 0x399   : > { %v928_v32 = vpop.xlane.xlu0 %927 }
 0x39a   : > { %1601 = vrcp.f32 %v928_v32 }
 0x3a0   : > { %v626_v20 = vpop.f32.mrf.mxu0 }
 0x3a1   : > { %v633_v21 = vmul.f32 %v1596_v19, %v626_v20 }
 0x3a2   : > { %v1443_v22 = vpop.f32.mrf.mxu0 }
 0x3a3   : > { %634 = vst.msk [vmem:[#allocation2] sm:$0xff] %vm525_vm2, %v633_v21 }
 0x3a4   : > { %v629_v23 = vpop.f32.mrf.mxu0 }
 0x3a6   : > { %v1444_v24 = vpop.f32.mrf.mxu0 }
 0x3a7   : > { %v1602_v41 = vpop.eup %1601 }
 0x3a8   : > { %v738_v26 = vpop.f32.mrf.mxu0 }
 0x3a9   : > { %v745_v27 = vmul.f32 %v1598_v25, %v738_v26 }
 0x3aa   : > { %v1455_v28 = vpop.f32.mrf.mxu0 }
 0x3ab   : > { %747 = vrot.lane.b32.xlu0 %v745_v27, %s1715_s23 }
 0x3ac   : > { %v741_v29 = vpop.f32.mrf.mxu0 }
 0x3ae   : > { %v1456_v30 = vpop.f32.mrf.mxu0 }
 0x3c5   : > { %v855_v34 = vpop.f32.mrf.mxu0 }
 0x3c6   : > { %v862_v35 = vmul.f32 %v1600_v33, %v855_v34 }
 0x3c7   : > { %v1467_v36 = vpop.f32.mrf.mxu0 }
 0x3c8   : > { %864 = vrot.lane.b32.xlu1 %v862_v35, %s1716_s15 }
 0x3c9   : > { %v858_v38 = vpop.f32.mrf.mxu0 }
 0x3cb   : > { %v1468_v40 = vpop.f32.mrf.mxu0 }
 0x3d1   : > { %v972_v42 = vpop.f32.mrf.mxu0 }
 0x3d2   : > { %v979_v43 = vmul.f32 %v1602_v41, %v972_v42  ;;  %v1389_v42 = vld [vmem:[%s2047_s11] ss:$0 sm:$0xff] }
 0x3d3   : > { %v1479_v44 = vpop.f32.mrf.mxu0 }
 0x3d4   : > { %981 = vrot.lane.b32.xlu1 %v979_v43, %s1717_s20  ;;  %v1390_v44 = vld [vmem:[%s2048_s12] ss:$0 sm:$0xff]  ;;  %s1282_s20 = sshll.u32 %s446_s21, 4  ;;  %s1283_s20 = int_to_ptr.vmem [resolvable:$true] %s1282_s20 }
 0x3d5   : > { %v975_v45 = vpop.f32.mrf.mxu0  ;;  %s1633_s23 = scalar_lea.vmem %s1283_s20, 128  ;;  %p1640_p11 = scmp.lt.s32.totalorder %s1283_s20, %s1638_s30 }
 0x3d6   : > { %p1634_p6 = scmp.ne.s32.totalorder %s1283_s20, %s1633_s23  ;;  %p1641_p12 = scmp.lt.s32.totalorder %s1639_s29, %s1633_s23 }
 0x3d7   : > { %v1480_v46 = vpop.f32.mrf.mxu0 }
 0x3d8   : > { %p1635_p9 = pnand %p1634_p6, %p1827_p5  ;;  %p1642_p13 = por %p1641_p12, %p1640_p11 }
 0x3da   : > { %p1636_p10 = pneg %p1635_p9 }
 0x3dc   : > { %p1643_p0 = pnand %p1642_p13, %p1636_p10 }
 0x41d   : > { %v748_v47 = vpop.permute.xlu0 %747 }
 0x41e   : > { %751 = vst.msk [vmem:[#allocation2] sm:$0xff] %vm750_vm4, %v748_v47 }
 0x43a   : > { %v865_v48 = vpop.permute.xlu1 %864 }
 0x43b   : > { %868 = vst.msk [vmem:[#allocation2] sm:$0xff] %vm867_vm5, %v865_v48 }
 0x446   : > { %v982_v49 = vpop.permute.xlu1 %981 }
 0x447   : > { %985 = vst.msk [vmem:[#allocation2] sm:$0xff] %vm984_vm6, %v982_v49 }
 0x44e   : > { %v986_v50 = vld [vmem:[#allocation2] sm:$0xff] }
 0x44f   : > { %v987_v51 = vpack.c.bf16 %v986_v50, %v986_v50 }
 0x451   : > { %1486 = vmatmul.mubr.msk.bf16.vlgmr.msra.gmra.mxu1 %vm477_vm1, %v987_v51 }
 0x452   : > { %1505 = vmatprep.mubr.msk.bf16.mxu1 %vm1703_vm0, %v1702_v0 }
 0x511   : > { %v1048_v53 = vpop.f32.mrf.mxu1 }
 0x512   : > { %v1049_v54 = vadd.f32 %v1373_v52, %v1048_v53 }
 0x513   : > { %v1487_v55 = vpop.f32.mrf.mxu1 }
 0x514   : > { %v1054_v56 = vadd.f32 %v1049_v54, %v1872_v3  ;;  %v1583_v3 = vld [vmem:[%s2043_s7 + $0x18] sm:$0xff]  }
 0x515   : > { %v1051_v57 = vpop.f32.mrf.mxu1  ;;  %1498 = vmatpush3.bf16.msra.mxu1 %v1583_v3 }
 0x516   : > { %v1055_v58 = vsel %vm477_vm1, %v1054_v56, 0.0  ;;  %1499 = vmatprep.subr.bf16.mxu1 %v1702_v0 }
 0x517   : > { %1056 = vadd.xlane.f32.xlu0 %v1055_v58  ;;  %v1488_v59 = vpop.f32.mrf.mxu1 }
 0x519   : > { %1500 = vmatpush3.bf16.msra.mxu1 %v1584_v5 }
 0x51a   : > { %1501 = vmatprep.subr.bf16.mxu1 %v1702_v0 }
 0x51d   : > { %1502 = vmatpush3.bf16.msra.mxu1 %v1585_v16 }
 0x51e   : > { %1503 = vmatprep.subr.bf16.mxu1 %v1702_v0  ;;  %v1383_v0 = vld [vmem:[%s2044_s8] ss:$0 sm:$0xff] }
 0x521   : > { %1504 = vmatpush3.bf16.msra.mxu1 %v1586_v17 }
 0x5a0   : > { %v1057_v60 = vpop.xlane.xlu0 %1056 }
 0x5a1   : > { %v1059_v61 = vmul.f32 0.03125, %v1057_v60 }
 0x5a3   : > { %v1060_v62 = vsub.f32 %v1054_v56, %v1059_v61 }
 0x5a5   : > { %v1061_v63 = vmul.f32 %v1060_v62, %v1060_v62 }
 0x5a7   : > { %v1062_v1 = vsel %vm477_vm1, %v1061_v63, 0.0 }
 0x5a8   : > { %1063 = vadd.xlane.f32.xlu1 %v1062_v1 }
 0x631   : > { %v1064_v6 = vpop.xlane.xlu1 %1063 }
 0x632   : > { %v1065_v7 = vmul.f32 0.03125, %v1064_v6 }
 0x634   : > { %v1066_v8 = vadd.f32 1e-05, %v1065_v7 }
 0x636   : > { %1603 = vrsqrt.f32 %v1066_v8 }
 0x643   : > { %v1604_v9 = vpop.eup %1603 }
 0x644   : > { %v1068_v11 = vmul.f32 %v1604_v9, %v1060_v62 }
 0x646   : > { %v1076_v13 = vmul.f32 %v1377_v10, %v1068_v11 }
 0x648   : > { %v1084_v14 = vadd.f32 %v1378_v12, %v1076_v13 }
 0x64a   : > { %v1085_v15 = vpack.c.bf16 %v1084_v14, %v1084_v14 }
 0x64c   : > { %1494 = vmatmul.mubr.msk.bf16.vlgmr.msra.gmra.mxu0 %vm477_vm1, %v1085_v15 }
 0x70c   : > { %v1146_v19 = vpop.f32.mrf.mxu0 }
 0x70d   : > { %v1147_v20 = vadd.f32 %v1379_v18, %v1146_v19 }
 0x70e   : > { %v1495_v21 = vpop.f32.mrf.mxu0 }
 0x70f   : > { %v1152_v22 = vmax.f32 %v1147_v20, 0.0 }
 0x710   : > { %v1149_v23 = vpop.f32.mrf.mxu0 }
 0x711   : > { %v1153_v24 = vpack.c.bf16 %v1152_v22, %v1152_v22 }
 0x712   : > { %v1496_v25 = vpop.f32.mrf.mxu0 }
 0x713   : > { %1506 = vmatmul.mubr.msk.bf16.vlgmr.msra.gmra.mxu1 %vm1193_vm7, %v1153_v24 }
 0x7d3   : > { %v1231_v26 = vpop.f32.mrf.mxu1 }
 0x7d4   : > { %v1232_v27 = vadd.f32 %v1383_v0, %v1231_v26 }
 0x7d5   : > { %v1507_v28 = vpop.f32.mrf.mxu1 }
 0x7d6   : > { %v1237_v29 = vadd.f32 %v1232_v27, %v1084_v14 }
 0x7d7   : > { %v1234_v30 = vpop.f32.mrf.mxu1 }
 0x7d8   : > { %v1238_v31 = vsel %vm477_vm1, %v1237_v29, 0.0 }
 0x7d9   : > { %1239 = vadd.xlane.f32.xlu0 %v1238_v31  ;;  %v1508_v32 = vpop.f32.mrf.mxu1 }
 0x862   : > { %v1240_v33 = vpop.xlane.xlu0 %1239 }
 0x863   : > { %v1241_v34 = vmul.f32 0.03125, %v1240_v33 }
 0x865   : > { %v1242_v35 = vsub.f32 %v1237_v29, %v1241_v34 }
 0x867   : > { %v1243_v36 = vmul.f32 %v1242_v35, %v1242_v35 }
 0x869   : > { %v1244_v37 = vsel %vm477_vm1, %v1243_v36, 0.0 }
 0x86a   : > { %1245 = vadd.xlane.f32.xlu0 %v1244_v37 }
 0x8f3   : > { %v1246_v38 = vpop.xlane.xlu0 %1245 }
 0x8f4   : > { %v1247_v39 = vmul.f32 0.03125, %v1246_v38 }
 0x8f6   : > { %v1248_v40 = vadd.f32 1e-05, %v1247_v39 }
 0x8f8   : > { %1605 = vrsqrt.f32 %v1248_v40 }
 0x905   : > { %v1606_v41 = vpop.eup %1605 }
 0x906   : > { %v1250_v43 = vmul.f32 %v1606_v41, %v1242_v35 }
 0x908   : > { %v1258_v45 = vmul.f32 %v1389_v42, %v1250_v43 }
 0x90a   : > { %v1266_v46 = vadd.f32 %v1390_v44, %v1258_v45 }
 0x90c   : > { %1267 = vst.msk [vmem:[%s446_s21] sm:$0xff] %vm477_vm1, %v1266_v46 }
 0x90d   : > { %1646 = shalt.err (!%p1643_p0)
}
 0x90e   : > { %s1647_s0 = scalar_lea.hbm %s1280_s2, 128  ;;  %s1651_s22 = scalar_lea.hbm %s2049_s13, 256 }
 0x90f   : > { %p1648_p1 = scmp.ne.s32.totalorder %s1280_s2, %s1647_s0  ;;  %p1652_p4 = scmp.lt.s32.totalorder %s1280_s2, %s2049_s13 }
 0x910   : > { %p1653_p7 = scmp.lt.s32.totalorder %s1651_s22, %s1647_s0 }
 0x911   : > { %p1649_p2 = pnand %p1648_p1, %p1827_p5 }
 0x912   : > { %p1654_p8 = por %p1653_p7, %p1652_p4 }
 0x913   : > { %p1650_p3 = pneg %p1649_p2 }
 0x915   : > { %p1655_p6 = pnand %p1654_p8, %p1650_p3 }
 0x917   : > { %1658 = shalt.err (!%p1655_p6)
}
 0x918   : > { %1513 = dma.vmem_to_hbm [thread:$0]  (%p1827_p5), %s1283_s20, 128, %s1280_s2, %s1269_s3  }
 0x919 PF: > { %p1525_p9 = scmp.ge.s32.totalorder %s1697_s28, 2  ;;  %s1294_s21 = sand.u32 1, %s1685_s25  }
 0x91a   : > { %p2063_p10 = scmp.ne.s32.totalorder %s2056_s19, 0  ;;  %s1295_s23 = scalar_lea.sflag [#allocation5], %s1294_s21 }
 0x91c   : > { %p1520_p11 = pnand %p1525_p9, %p2063_p10 }
 0x91e   : > { %p1521_p12 = pneg %p1520_p11 }
 0x920   : > { %1680 = dma.done.wait (%p1521_p12), %s1295_s23, 128  }
 0x921   : > { %1682 = vsyncadd (%p1521_p12), %s1295_s23, 4294967168  ;;  %p24_p13 = scmp.ge.s32.totalorder %s1814_s14, 4   ;;  %s2064_s25 = smov %s1689_s26 }
 0x922   : > { %s2065_s26 = smov %s1693_s27  ;;  %s2066_s27 = smov %s1825_s17 }
 0x923   : > { %s2067_s28 = smov %s1814_s14  ;;  %26 = sbr.rel (!%p24_p13) target bundleno = 10 (0xa), region = 112 }
 0x928   :  { %1300 = vsyncpa [#allocation4], 1 }
 0x929   :  { %1302 = vsyncpa [#allocation4 + $0x1], 1 }
 0x92a   :  { %1303 = vsyncpa [#allocation5], 1 }
 0x92b   :  { %1305 = vsyncpa [#allocation5 + $0x1], 1 }

</bundles_post_ra>
